<compile_context>
chip_gen: v6e
topology: v6e:2x2x1
jax: 0.10.0
libtpu: 0.0.40
codegen_flags: <defaults>
</compile_context>

<pallas_src>
import functools
import math

import jax
import jax.numpy as jnp
import numpy as np
from jax.experimental import pallas as pl
from jax.experimental.pallas import tpu as pltpu

EPS = 1e-12


# ---------------------------------------------------------------------------
# LayerNorm helpers.  Matches the PyTorch Layer_Norm: mean / unbiased std
# (divide by D-1), eps added to the std (not the variance).
# ---------------------------------------------------------------------------
def _ln(x, gamma, beta, eps=EPS):
    """In-kernel LayerNorm (f32 stats, EUP reciprocal instead of a divide)."""
    mean = jnp.mean(x, axis=-1, keepdims=True)
    d = x - mean
    var = jnp.sum(d * d, axis=-1, keepdims=True) * (1.0 / (x.shape[-1] - 1))
    std = jnp.sqrt(var)
    inv = pl.reciprocal(std + eps, approx=False)
    return gamma * (d * inv) + beta


def _layer_norm_ref(x, gamma, beta, eps=EPS):
    """Pure-JAX reference LayerNorm (plain division)."""
    mean = jnp.mean(x, axis=-1, keepdims=True)
    d = x - mean
    var = jnp.sum(d * d, axis=-1, keepdims=True) / (x.shape[-1] - 1)
    std = jnp.sqrt(var)
    return gamma * (d / (std + eps)) + beta


# ---------------------------------------------------------------------------
# Pallas kernel: one grid step = (one batch element, one query tile).
# K/V for the full sequence of a batch element live in VMEM scratch
# (head-major, bf16), computed once at the first query tile.
# ---------------------------------------------------------------------------
def encoder_layer_kernel(xq_ref, xf_ref, mask_ref,
                         wq_ref, bq_ref, wk_ref, bk_ref, wv_ref, bv_ref,
                         wo_ref, bo_ref, w1_ref, b1_ref, w2_ref, b2_ref,
                         g1_ref, beta1_ref, g2_ref, beta2_ref,
                         o_ref,
                         k_scr, v_scr,
                         *, num_heads):
    f32 = jnp.float32
    bf16 = jnp.bfloat16

    H = num_heads
    TQ, D = xq_ref.shape[1], xq_ref.shape[2]
    T = xf_ref.shape[1]
    dk = D // H
    scale = 1.0 / math.sqrt(dk)

    g1 = g1_ref[...]
    beta1 = beta1_ref[...]

    # ---- Per-batch K/V: computed once per batch element (qi == 0), kept in
    # VMEM scratch (head-major bf16) across all query tiles. -----------------
    @pl.when(pl.program_id(1) == 0)
    def _():
        xf = xf_ref[0].astype(f32)                         # (T, D), bf16 stream upcast
        h_kv = _ln(xf, g1, beta1)                          # f32 statistics
        h_kv_b = h_kv.astype(bf16)
        k = jnp.dot(h_kv_b, wk_ref[...], preferred_element_type=f32) + bk_ref[...]
        v = jnp.dot(h_kv_b, wv_ref[...], preferred_element_type=f32) + bv_ref[...]
        # One amortized relayout per batch element -> clean leading-batch
        # MXU contractions for every query tile.
        k_scr[...] = jnp.transpose(k.reshape(T, H, dk).astype(bf16), (1, 0, 2))
        v_scr[...] = jnp.transpose(v.reshape(T, H, dk).astype(bf16), (1, 0, 2))

    # ---- Sublayer 1: x + self_attn(LayerNorm(x)) ---------------------------
    xq = xq_ref[0]                                         # (TQ, D) f32 residual rows
    h_q = _ln(xq, g1, beta1)
    q = jnp.dot(h_q.astype(bf16), wq_ref[...],
                preferred_element_type=f32) + bq_ref[...]
    q = q * scale                                          # fold 1/sqrt(dk) here (small tensor)
    qh = jnp.transpose(q.reshape(TQ, H, dk).astype(bf16), (1, 0, 2))   # (H, TQ, dk)

    s = jnp.einsum('hqd,hkd->hqk', qh, k_scr[...],
                   preferred_element_type=f32)             # (H, TQ, T)
    # Additive mask bias: 0 where mask==1, -1e9 where mask==0.
    mask_bias = (mask_ref[0] - 1.0) * 1e9                  # (1, T)
    s = s + mask_bias[None, :, :]
    # NOTE: fully-masked rows softmax over uniform -1e9 -> unmasked average of
    # V, consistent with the reference module.

    m = jnp.max(s, axis=-1, keepdims=True)
    e = jnp.exp(s - m)
    p = e * pl.reciprocal(jnp.sum(e, axis=-1, keepdims=True), approx=True)

    ctx = jnp.einsum('hqk,hkd->hqd', p.astype(bf16), v_scr[...],
                     preferred_element_type=f32)           # (H, TQ, dk)
    ctx = jnp.transpose(ctx.astype(bf16), (1, 0, 2)).reshape(TQ, D)
    attn = jnp.dot(ctx, wo_ref[...], preferred_element_type=f32) + bo_ref[...]
    x1 = xq + attn

    # ---- Sublayer 2: x + FFN(LayerNorm(x)) ---------------------------------
    h2 = _ln(x1, g2_ref[...], beta2_ref[...])
    ff = jnp.maximum(
        jnp.dot(h2.astype(bf16), w1_ref[...],
                preferred_element_type=f32) + b1_ref[...], 0.0)
    ff = jnp.dot(ff.astype(bf16), w2_ref[...],
                 preferred_element_type=f32) + b2_ref[...]

    o_ref[0] = (x1 + ff).astype(o_ref.dtype)


def _default_q_tile(T):
    # 256 fills the 256-wide MXU M dim on v6e/v7x; fall back to smaller tiles
    # that divide T.  (On v5e, callers may prefer to pass q_tile=128.)
    for cand in (256, 128, 64, 32, 16, 8):
        if T % cand == 0:
            return min(cand, T)
    return T


def encoder_layer_forward(x, x_mask, params, *, num_heads, q_tile=None):
    B, T, D = x.shape
    if q_tile is None:
        q_tile = _default_q_tile(T)
    assert T % q_tile == 0, "T must be divisible by q_tile"
    assert D % num_heads == 0

    (wq, bq, wk, bk, wv, bv, wo, bo,
     w1, b1, w2, b2, g1, be1, g2, be2) = params
    F = w1.shape[-1]
    dk = D // num_heads

    bf = jnp.bfloat16
    wq_b, wk_b, wv_b, wo_b = (w.astype(bf) for w in (wq, wk, wv, wo))
    w1_b, w2_b = w1.astype(bf), w2.astype(bf)
    x_kv = x.astype(bf)          # bf16 K/V-source stream: half the DMA / VMEM

    def rep(shape):
        # Replicated (grid-invariant) parameter tile; single-buffered because
        # a constant index_map is never re-fetched.
        return pl.BlockSpec(shape, lambda b, qi, _n=len(shape): (0,) * _n,
                            pipeline_mode=pl.Buffered(1))

    kernel = functools.partial(encoder_layer_kernel, num_heads=num_heads)

    return pl.pallas_call(
        kernel,
        out_shape=jax.ShapeDtypeStruct((B, T, D), jnp.float32),
        grid_spec=pltpu.PrefetchScalarGridSpec(
            num_scalar_prefetch=0,
            grid=(B, T // q_tile),
            in_specs=[
                pl.BlockSpec((1, q_tile, D), lambda b, qi: (b, qi, 0)),  # residual q-tile (f32)
                pl.BlockSpec((1, T, D), lambda b, qi: (b, 0, 0)),        # full seq, K/V src (bf16)
                pl.BlockSpec((1, 1, T), lambda b, qi: (b, 0, 0)),        # mask
                rep((D, D)), rep((1, D)),   # Wq, bq
                rep((D, D)), rep((1, D)),   # Wk, bk
                rep((D, D)), rep((1, D)),   # Wv, bv
                rep((D, D)), rep((1, D)),   # Wo, bo
                rep((D, F)), rep((1, F)),   # FFN W1, b1
                rep((F, D)), rep((1, D)),   # FFN W2, b2
                rep((1, D)), rep((1, D)),   # LN1 gamma (param_std), beta (param_mean)
                rep((1, D)), rep((1, D)),   # LN2 gamma, beta
            ],
            out_specs=pl.BlockSpec((1, q_tile, D), lambda b, qi: (b, qi, 0)),
            scratch_shapes=[
                pltpu.VMEM((num_heads, T, dk), jnp.bfloat16),  # K (head-major)
                pltpu.VMEM((num_heads, T, dk), jnp.bfloat16),  # V (head-major)
            ],
        ),
        compiler_params=pltpu.CompilerParams(
            # qi must be "arbitrary" so per-batch K/V scratch persists across
            # query tiles; b stays "parallel" for megacore sharding.
            dimension_semantics=("parallel", "arbitrary"),
            vmem_limit_bytes=64 * 1024 * 1024),
    )(x, x_kv, x_mask,
      wq_b, bq, wk_b, bk, wv_b, bv, wo_b, bo,
      w1_b, b1, w2_b, b2, g1, be1, g2, be2)


# ---------------------------------------------------------------------------
# Pure-JAX f32 reference (same math, no Pallas) for validation.
# ---------------------------------------------------------------------------
def encoder_layer_ref(x, x_mask, params, *, num_heads):
    (wq, bq, wk, bk, wv, bv, wo, bo,
     w1, b1, w2, b2, g1, be1, g2, be2) = params
    outs = []
    for bi in range(x.shape[0]):
        xb = x[bi]          # (T, D)
        mb = x_mask[bi]     # (1, T)
        T, D = xb.shape
        H = num_heads
        dk = D // H

        h = _layer_norm_ref(xb, g1, be1)
        q = h @ wq + bq
        k = h @ wk + bk
        v = h @ wv + bv
        s = jnp.einsum('qhd,khd->hqk',
                       q.reshape(T, H, dk), k.reshape(T, H, dk)) / math.sqrt(dk)
        s = jnp.where(mb[None, :, :] < 0.5, -1e9, s)
        p = jax.nn.softmax(s, axis=-1)
        ctx = jnp.einsum('hqk,khd->qhd', p, v.reshape(T, H, dk)).reshape(T, D)
        x1 = xb + ctx @ wo + bo

        h2 = _layer_norm_ref(x1, g2, be2)
        ff = jnp.maximum(h2 @ w1 + b1, 0.0) @ w2 + b2
        outs.append(x1 + ff)
    return jnp.stack(outs)


if __name__ == "__main__":
    B, T, D, H, F = 2, 16, 32, 4, 64
    TQ = 8  # two query tiles per batch element -> exercises the K/V scratch reuse

    key = jax.random.PRNGKey(0)
    ks = jax.random.split(key, 14)

    x = jax.random.normal(ks[0], (B, T, D), jnp.float32)
    x_mask = jnp.ones((B, 1, T), jnp.float32).at[1, 0, T - 4:].set(0.0)

    def rw(k, shape, scale=0.1):
        w = scale * jax.random.normal(k, shape, jnp.float32)
        # Pre-round to bf16 so the kernel's bf16 weight cast is exact and the
        # f32 reference uses identical weight values.
        return w.astype(jnp.bfloat16).astype(jnp.float32)

    wq = rw(ks[1], (D, D)); wk = rw(ks[2], (D, D))
    wv = rw(ks[3], (D, D)); wo = rw(ks[4], (D, D))
    bq = rw(ks[5], (1, D)); bk = rw(ks[6], (1, D))
    bv = rw(ks[7], (1, D)); bo = rw(ks[8], (1, D))
    w1 = rw(ks[9], (D, F)); b1 = rw(ks[10], (1, F))
    w2 = rw(ks[11], (F, D)); b2 = rw(ks[12], (1, D))
    g1 = jnp.ones((1, D), jnp.float32); be1 = jnp.zeros((1, D), jnp.float32)
    g2 = jnp.ones((1, D), jnp.float32); be2 = jnp.zeros((1, D), jnp.float32)
    params = (wq, bq, wk, bk, wv, bv, wo, bo,
              w1, b1, w2, b2, g1, be1, g2, be2)

    out = encoder_layer_forward(x, x_mask, params, num_heads=H, q_tile=TQ)
    jax.block_until_ready(out)

    ref = encoder_layer_ref(x, x_mask, params, num_heads=H)
    # bf16 matmul inputs / bf16 K-V source stream with f32 accumulation ->
    # loosened tolerance vs the pure-f32 reference.
    np.testing.assert_allclose(np.asarray(out), np.asarray(ref),
                               rtol=2e-2, atol=2e-2)
    print("KERNEL_OK")
</pallas_src>

<mosaic_0001>
module attributes {stable_mosaic.version = 11 : i64} {
  func.func @encoder_layer_kernel(%arg0: i32, %arg1: i32, %arg2: memref<1x8x32xf32, #tpu.memory_space<vmem>>, %arg3: memref<1x16x32xbf16, #tpu.memory_space<vmem>>, %arg4: memref<1x1x16xf32, #tpu.memory_space<vmem>>, %arg5: memref<32x32xbf16, #tpu.memory_space<vmem>>, %arg6: memref<1x32xf32, #tpu.memory_space<vmem>>, %arg7: memref<32x32xbf16, #tpu.memory_space<vmem>>, %arg8: memref<1x32xf32, #tpu.memory_space<vmem>>, %arg9: memref<32x32xbf16, #tpu.memory_space<vmem>>, %arg10: memref<1x32xf32, #tpu.memory_space<vmem>>, %arg11: memref<32x32xbf16, #tpu.memory_space<vmem>>, %arg12: memref<1x32xf32, #tpu.memory_space<vmem>>, %arg13: memref<32x64xbf16, #tpu.memory_space<vmem>>, %arg14: memref<1x64xf32, #tpu.memory_space<vmem>>, %arg15: memref<64x32xbf16, #tpu.memory_space<vmem>>, %arg16: memref<1x32xf32, #tpu.memory_space<vmem>>, %arg17: memref<1x32xf32, #tpu.memory_space<vmem>>, %arg18: memref<1x32xf32, #tpu.memory_space<vmem>>, %arg19: memref<1x32xf32, #tpu.memory_space<vmem>>, %arg20: memref<1x32xf32, #tpu.memory_space<vmem>>, %arg21: memref<1x8x32xf32, #tpu.memory_space<vmem>>, %arg22: memref<4x16x8xbf16, #tpu.memory_space<vmem>>, %arg23: memref<4x16x8xbf16, #tpu.memory_space<vmem>>) attributes {dimension_semantics = [#tpu.dimension_semantics<parallel>, #tpu.dimension_semantics<arbitrary>], iteration_bounds = array<i64: 2, 2>, scalar_prefetch = 0 : i64, scratch_operands = 2 : i64, tpu.core_type = #tpu.core_type<tc>, window_params = [{transform_indices = @transform_0, window_bounds = array<i64: 1, 8, 32>}, {transform_indices = @transform_1, window_bounds = array<i64: 1, 16, 32>}, {transform_indices = @transform_2, window_bounds = array<i64: 1, 1, 16>}, {pipeline_mode = #tpu.pipeline_mode<synchronous>, transform_indices = @transform_3, window_bounds = array<i64: 32, 32>}, {pipeline_mode = #tpu.pipeline_mode<synchronous>, transform_indices = @transform_4, window_bounds = array<i64: 1, 32>}, {pipeline_mode = #tpu.pipeline_mode<synchronous>, transform_indices = @transform_5, window_bounds = array<i64: 32, 32>}, {pipeline_mode = #tpu.pipeline_mode<synchronous>, transform_indices = @transform_6, window_bounds = array<i64: 1, 32>}, {pipeline_mode = #tpu.pipeline_mode<synchronous>, transform_indices = @transform_7, window_bounds = array<i64: 32, 32>}, {pipeline_mode = #tpu.pipeline_mode<synchronous>, transform_indices = @transform_8, window_bounds = array<i64: 1, 32>}, {pipeline_mode = #tpu.pipeline_mode<synchronous>, transform_indices = @transform_9, window_bounds = array<i64: 32, 32>}, {pipeline_mode = #tpu.pipeline_mode<synchronous>, transform_indices = @transform_10, window_bounds = array<i64: 1, 32>}, {pipeline_mode = #tpu.pipeline_mode<synchronous>, transform_indices = @transform_11, window_bounds = array<i64: 32, 64>}, {pipeline_mode = #tpu.pipeline_mode<synchronous>, transform_indices = @transform_12, window_bounds = array<i64: 1, 64>}, {pipeline_mode = #tpu.pipeline_mode<synchronous>, transform_indices = @transform_13, window_bounds = array<i64: 64, 32>}, {pipeline_mode = #tpu.pipeline_mode<synchronous>, transform_indices = @transform_14, window_bounds = array<i64: 1, 32>}, {pipeline_mode = #tpu.pipeline_mode<synchronous>, transform_indices = @transform_15, window_bounds = array<i64: 1, 32>}, {pipeline_mode = #tpu.pipeline_mode<synchronous>, transform_indices = @transform_16, window_bounds = array<i64: 1, 32>}, {pipeline_mode = #tpu.pipeline_mode<synchronous>, transform_indices = @transform_17, window_bounds = array<i64: 1, 32>}, {pipeline_mode = #tpu.pipeline_mode<synchronous>, transform_indices = @transform_18, window_bounds = array<i64: 1, 32>}, {transform_indices = @transform_19, window_bounds = array<i64: 1, 8, 32>}]} {
    %c0 = arith.constant 0 : index
    %c0_0 = arith.constant 0 : index
    %0 = vector.load %arg17[%c0, %c0_0] : memref<1x32xf32, #tpu.memory_space<vmem>>, vector<1x32xf32>
    %c0_1 = arith.constant 0 : index
    %c0_2 = arith.constant 0 : index
    %1 = vector.load %arg18[%c0_1, %c0_2] : memref<1x32xf32, #tpu.memory_space<vmem>>, vector<1x32xf32>
    %c0_i32 = arith.constant 0 : i32
    %2 = arith.cmpi eq, %arg1, %c0_i32 : i32
    %3 = arith.extui %2 : i1 to i32
    %c0_i32_3 = arith.constant 0 : i32
    %4 = arith.cmpi ne, %3, %c0_i32_3 : i32
    scf.if %4 {
      %c0_60 = arith.constant 0 : index
      %c0_61 = arith.constant 0 : index
      %c0_62 = arith.constant 0 : index
      %113 = vector.load %arg3[%c0_60, %c0_61, %c0_62] : memref<1x16x32xbf16, #tpu.memory_space<vmem>>, vector<1x16x32xbf16>
      %114 = vector.shape_cast %113 : vector<1x16x32xbf16> to vector<16x32xbf16>
      %115 = arith.extf %114 : vector<16x32xbf16> to vector<16x32xf32>
      %cst_63 = arith.constant dense<0.000000e+00> : vector<16xf32>
      %116 = vector.multi_reduction <add>, %115, %cst_63 [1] : vector<16x32xf32> to vector<16xf32>
      %117 = vector.shape_cast %116 : vector<16xf32> to vector<16x1xf32>
      %cst_64 = arith.constant 3.200000e+01 : f32
      %118 = vector.broadcast %cst_64 : f32 to vector<16x1xf32>
      %119 = arith.divf %117, %118 : vector<16x1xf32>
      %120 = vector.broadcast %119 : vector<16x1xf32> to vector<16x32xf32>
      %121 = arith.subf %115, %120 : vector<16x32xf32>
      %122 = arith.mulf %121, %121 : vector<16x32xf32>
      %cst_65 = arith.constant dense<0.000000e+00> : vector<16xf32>
      %123 = vector.multi_reduction <add>, %122, %cst_65 [1] : vector<16x32xf32> to vector<16xf32>
      %124 = vector.shape_cast %123 : vector<16xf32> to vector<16x1xf32>
      %cst_66 = arith.constant 0.0322580636 : f32
      %125 = vector.broadcast %cst_66 : f32 to vector<16x1xf32>
      %126 = arith.mulf %124, %125 : vector<16x1xf32>
      %127 = math.sqrt %126 : vector<16x1xf32>
      %cst_67 = arith.constant 9.99999996E-13 : f32
      %128 = vector.broadcast %cst_67 : f32 to vector<16x1xf32>
      %129 = arith.addf %127, %128 : vector<16x1xf32>
      %130 = tpu.reciprocal %129 : vector<16x1xf32> -> vector<16x1xf32>
      %131 = vector.broadcast %130 : vector<16x1xf32> to vector<16x32xf32>
      %132 = arith.mulf %121, %131 : vector<16x32xf32>
      %133 = vector.broadcast %0 : vector<1x32xf32> to vector<16x32xf32>
      %134 = arith.mulf %133, %132 : vector<16x32xf32>
      %135 = vector.broadcast %1 : vector<1x32xf32> to vector<16x32xf32>
      %136 = arith.addf %134, %135 : vector<16x32xf32>
      %137 = arith.truncf %136 : vector<16x32xf32> to vector<16x32xbf16>
      %c0_68 = arith.constant 0 : index
      %c0_69 = arith.constant 0 : index
      %138 = vector.load %arg7[%c0_68, %c0_69] : memref<32x32xbf16, #tpu.memory_space<vmem>>, vector<32x32xbf16>
      %cst_70 = arith.constant dense<0.000000e+00> : vector<16x32xf32>
      %139 = tpu.matmul %137, %138, %cst_70 {dimension_numbers = #tpu.dot_dimension_numbers<[1], [0], [0], [1], [0, 0, 1, 1], [], []>} : vector<16x32xbf16>, vector<32x32xbf16>, vector<16x32xf32> -> vector<16x32xf32>
      %c0_71 = arith.constant 0 : index
      %c0_72 = arith.constant 0 : index
      %140 = vector.load %arg8[%c0_71, %c0_72] : memref<1x32xf32, #tpu.memory_space<vmem>>, vector<1x32xf32>
      %141 = vector.broadcast %140 : vector<1x32xf32> to vector<16x32xf32>
      %142 = arith.addf %139, %141 : vector<16x32xf32>
      %c0_73 = arith.constant 0 : index
      %c0_74 = arith.constant 0 : index
      %143 = vector.load %arg9[%c0_73, %c0_74] : memref<32x32xbf16, #tpu.memory_space<vmem>>, vector<32x32xbf16>
      %cst_75 = arith.constant dense<0.000000e+00> : vector<16x32xf32>
      %144 = tpu.matmul %137, %143, %cst_75 {dimension_numbers = #tpu.dot_dimension_numbers<[1], [0], [0], [1], [0, 0, 1, 1], [], []>} : vector<16x32xbf16>, vector<32x32xbf16>, vector<16x32xf32> -> vector<16x32xf32>
      %c0_76 = arith.constant 0 : index
      %c0_77 = arith.constant 0 : index
      %145 = vector.load %arg10[%c0_76, %c0_77] : memref<1x32xf32, #tpu.memory_space<vmem>>, vector<1x32xf32>
      %146 = vector.broadcast %145 : vector<1x32xf32> to vector<16x32xf32>
      %147 = arith.addf %144, %146 : vector<16x32xf32>
      %148 = vector.shape_cast %142 : vector<16x32xf32> to vector<16x4x8xf32>
      %149 = arith.truncf %148 : vector<16x4x8xf32> to vector<16x4x8xbf16>
      %150 = tpu.transpose %149, [1, 0, 2] : vector<16x4x8xbf16> -> vector<4x16x8xbf16>
      %c0_78 = arith.constant 0 : index
      %c0_79 = arith.constant 0 : index
      %c0_80 = arith.constant 0 : index
      %151 = vector.load %arg22[%c0_78, %c0_79, %c0_80] : memref<4x16x8xbf16, #tpu.memory_space<vmem>>, vector<4x16x8xbf16>
      tpu.vector_store %arg22[%c0_78, %c0_79, %c0_80], %150 {strides = array<i32>} : memref<4x16x8xbf16, #tpu.memory_space<vmem>>, vector<4x16x8xbf16>,
      %152 = vector.shape_cast %147 : vector<16x32xf32> to vector<16x4x8xf32>
      %153 = arith.truncf %152 : vector<16x4x8xf32> to vector<16x4x8xbf16>
      %154 = tpu.transpose %153, [1, 0, 2] : vector<16x4x8xbf16> -> vector<4x16x8xbf16>
      %c0_81 = arith.constant 0 : index
      %c0_82 = arith.constant 0 : index
      %c0_83 = arith.constant 0 : index
      %155 = vector.load %arg23[%c0_81, %c0_82, %c0_83] : memref<4x16x8xbf16, #tpu.memory_space<vmem>>, vector<4x16x8xbf16>
      tpu.vector_store %arg23[%c0_81, %c0_82, %c0_83], %154 {strides = array<i32>} : memref<4x16x8xbf16, #tpu.memory_space<vmem>>, vector<4x16x8xbf16>,
    } else {
    }
    %c0_4 = arith.constant 0 : index
    %c0_5 = arith.constant 0 : index
    %c0_6 = arith.constant 0 : index
    %5 = vector.load %arg2[%c0_4, %c0_5, %c0_6] : memref<1x8x32xf32, #tpu.memory_space<vmem>>, vector<1x8x32xf32>
    %6 = vector.shape_cast %5 : vector<1x8x32xf32> to vector<8x32xf32>
    %cst = arith.constant dense<0.000000e+00> : vector<8xf32>
    %7 = vector.multi_reduction <add>, %6, %cst [1] : vector<8x32xf32> to vector<8xf32>
    %8 = vector.shape_cast %7 : vector<8xf32> to vector<8x1xf32>
    %cst_7 = arith.constant 3.200000e+01 : f32
    %9 = vector.broadcast %cst_7 : f32 to vector<8x1xf32>
    %10 = arith.divf %8, %9 : vector<8x1xf32>
    %11 = vector.broadcast %10 : vector<8x1xf32> to vector<8x32xf32>
    %12 = arith.subf %6, %11 : vector<8x32xf32>
    %13 = arith.mulf %12, %12 : vector<8x32xf32>
    %cst_8 = arith.constant dense<0.000000e+00> : vector<8xf32>
    %14 = vector.multi_reduction <add>, %13, %cst_8 [1] : vector<8x32xf32> to vector<8xf32>
    %15 = vector.shape_cast %14 : vector<8xf32> to vector<8x1xf32>
    %cst_9 = arith.constant 0.0322580636 : f32
    %16 = vector.broadcast %cst_9 : f32 to vector<8x1xf32>
    %17 = arith.mulf %15, %16 : vector<8x1xf32>
    %18 = math.sqrt %17 : vector<8x1xf32>
    %cst_10 = arith.constant 9.99999996E-13 : f32
    %19 = vector.broadcast %cst_10 : f32 to vector<8x1xf32>
    %20 = arith.addf %18, %19 : vector<8x1xf32>
    %21 = tpu.reciprocal %20 : vector<8x1xf32> -> vector<8x1xf32>
    %22 = vector.broadcast %21 : vector<8x1xf32> to vector<8x32xf32>
    %23 = arith.mulf %12, %22 : vector<8x32xf32>
    %24 = vector.broadcast %0 : vector<1x32xf32> to vector<8x32xf32>
    %25 = arith.mulf %24, %23 : vector<8x32xf32>
    %26 = vector.broadcast %1 : vector<1x32xf32> to vector<8x32xf32>
    %27 = arith.addf %25, %26 : vector<8x32xf32>
    %28 = arith.truncf %27 : vector<8x32xf32> to vector<8x32xbf16>
    %c0_11 = arith.constant 0 : index
    %c0_12 = arith.constant 0 : index
    %29 = vector.load %arg5[%c0_11, %c0_12] : memref<32x32xbf16, #tpu.memory_space<vmem>>, vector<32x32xbf16>
    %cst_13 = arith.constant dense<0.000000e+00> : vector<8x32xf32>
    %30 = tpu.matmul %28, %29, %cst_13 {dimension_numbers = #tpu.dot_dimension_numbers<[1], [0], [0], [1], [0, 0, 1, 1], [], []>} : vector<8x32xbf16>, vector<32x32xbf16>, vector<8x32xf32> -> vector<8x32xf32>
    %c0_14 = arith.constant 0 : index
    %c0_15 = arith.constant 0 : index
    %31 = vector.load %arg6[%c0_14, %c0_15] : memref<1x32xf32, #tpu.memory_space<vmem>>, vector<1x32xf32>
    %32 = vector.broadcast %31 : vector<1x32xf32> to vector<8x32xf32>
    %33 = arith.addf %30, %32 : vector<8x32xf32>
    %cst_16 = arith.constant 0.353553385 : f32
    %34 = vector.broadcast %cst_16 : f32 to vector<8x32xf32>
    %35 = arith.mulf %33, %34 : vector<8x32xf32>
    %36 = vector.shape_cast %35 : vector<8x32xf32> to vector<8x4x8xf32>
    %37 = arith.truncf %36 : vector<8x4x8xf32> to vector<8x4x8xbf16>
    %38 = tpu.transpose %37, [1, 0, 2] : vector<8x4x8xbf16> -> vector<4x8x8xbf16>
    %c0_17 = arith.constant 0 : index
    %c0_18 = arith.constant 0 : index
    %c0_19 = arith.constant 0 : index
    %39 = vector.load %arg22[%c0_17, %c0_18, %c0_19] : memref<4x16x8xbf16, #tpu.memory_space<vmem>>, vector<4x16x8xbf16>
    "tpu.trace_start"() <{level = 10 : i32, message = "hqd,hkd->hqk"}> : () -> ()
    %cst_20 = arith.constant dense<0.000000e+00> : vector<4x8x16xf32>
    %40 = tpu.matmul %38, %39, %cst_20 {dimension_numbers = #tpu.dot_dimension_numbers<[2], [2], [1], [1], [0, 0, 0, 1, 1, 1], [0], [0]>} : vector<4x8x8xbf16>, vector<4x16x8xbf16>, vector<4x8x16xf32> -> vector<4x8x16xf32>
    "tpu.trace_stop"() : () -> ()
    %c0_21 = arith.constant 0 : index
    %c0_22 = arith.constant 0 : index
    %c0_23 = arith.constant 0 : index
    %41 = vector.load %arg4[%c0_21, %c0_22, %c0_23] : memref<1x1x16xf32, #tpu.memory_space<vmem>>, vector<1x1x16xf32>
    %42 = vector.shape_cast %41 : vector<1x1x16xf32> to vector<1x16xf32>
    %cst_24 = arith.constant 1.000000e+00 : f32
    %43 = vector.broadcast %cst_24 : f32 to vector<1x16xf32>
    %44 = arith.subf %42, %43 : vector<1x16xf32>
    %cst_25 = arith.constant 1.000000e+09 : f32
    %45 = vector.broadcast %cst_25 : f32 to vector<1x16xf32>
    %46 = arith.mulf %44, %45 : vector<1x16xf32>
    %47 = vector.shape_cast %46 : vector<1x16xf32> to vector<1x1x16xf32>
    %48 = vector.broadcast %47 : vector<1x1x16xf32> to vector<4x8x16xf32>
    %49 = arith.addf %40, %48 : vector<4x8x16xf32>
    %cst_26 = arith.constant dense<0xFF800000> : vector<4x8xf32>
    %50 = vector.multi_reduction <maximumf>, %49, %cst_26 [2] : vector<4x8x16xf32> to vector<4x8xf32>
    %51 = vector.shape_cast %50 : vector<4x8xf32> to vector<4x8x1xf32>
    %52 = vector.broadcast %51 : vector<4x8x1xf32> to vector<4x8x16xf32>
    %53 = arith.subf %49, %52 : vector<4x8x16xf32>
    %54 = math.exp %53 : vector<4x8x16xf32>
    %cst_27 = arith.constant dense<0.000000e+00> : vector<4x8xf32>
    %55 = vector.multi_reduction <add>, %54, %cst_27 [2] : vector<4x8x16xf32> to vector<4x8xf32>
    %56 = vector.shape_cast %55 : vector<4x8xf32> to vector<4x8x1xf32>
    %57 = tpu.reciprocal %56 {approx = true} : vector<4x8x1xf32> -> vector<4x8x1xf32>
    %58 = vector.broadcast %57 : vector<4x8x1xf32> to vector<4x8x16xf32>
    %59 = arith.mulf %54, %58 : vector<4x8x16xf32>
    %60 = arith.truncf %59 : vector<4x8x16xf32> to vector<4x8x16xbf16>
    %c0_28 = arith.constant 0 : index
    %c0_29 = arith.constant 0 : index
    %c0_30 = arith.constant 0 : index
    %61 = vector.load %arg23[%c0_28, %c0_29, %c0_30] : memref<4x16x8xbf16, #tpu.memory_space<vmem>>, vector<4x16x8xbf16>
    "tpu.trace_start"() <{level = 10 : i32, message = "hqk,hkd->hqd"}> : () -> ()
    %cst_31 = arith.constant dense<0.000000e+00> : vector<4x8x8xf32>
    %62 = tpu.matmul %60, %61, %cst_31 {dimension_numbers = #tpu.dot_dimension_numbers<[2], [1], [1], [2], [0, 0, 0, 1, 1, 2], [0], [0]>} : vector<4x8x16xbf16>, vector<4x16x8xbf16>, vector<4x8x8xf32> -> vector<4x8x8xf32>
    "tpu.trace_stop"() : () -> ()
    %63 = arith.truncf %62 : vector<4x8x8xf32> to vector<4x8x8xbf16>
    %64 = tpu.transpose %63, [1, 0, 2] : vector<4x8x8xbf16> -> vector<8x4x8xbf16>
    %65 = vector.shape_cast %64 : vector<8x4x8xbf16> to vector<8x32xbf16>
    %c0_32 = arith.constant 0 : index
    %c0_33 = arith.constant 0 : index
    %66 = vector.load %arg11[%c0_32, %c0_33] : memref<32x32xbf16, #tpu.memory_space<vmem>>, vector<32x32xbf16>
    %cst_34 = arith.constant dense<0.000000e+00> : vector<8x32xf32>
    %67 = tpu.matmul %65, %66, %cst_34 {dimension_numbers = #tpu.dot_dimension_numbers<[1], [0], [0], [1], [0, 0, 1, 1], [], []>} : vector<8x32xbf16>, vector<32x32xbf16>, vector<8x32xf32> -> vector<8x32xf32>
    %c0_35 = arith.constant 0 : index
    %c0_36 = arith.constant 0 : index
    %68 = vector.load %arg12[%c0_35, %c0_36] : memref<1x32xf32, #tpu.memory_space<vmem>>, vector<1x32xf32>
    %69 = vector.broadcast %68 : vector<1x32xf32> to vector<8x32xf32>
    %70 = arith.addf %67, %69 : vector<8x32xf32>
    %71 = arith.addf %6, %70 : vector<8x32xf32>
    %c0_37 = arith.constant 0 : index
    %c0_38 = arith.constant 0 : index
    %72 = vector.load %arg19[%c0_37, %c0_38] : memref<1x32xf32, #tpu.memory_space<vmem>>, vector<1x32xf32>
    %c0_39 = arith.constant 0 : index
    %c0_40 = arith.constant 0 : index
    %73 = vector.load %arg20[%c0_39, %c0_40] : memref<1x32xf32, #tpu.memory_space<vmem>>, vector<1x32xf32>
    %cst_41 = arith.constant dense<0.000000e+00> : vector<8xf32>
    %74 = vector.multi_reduction <add>, %71, %cst_41 [1] : vector<8x32xf32> to vector<8xf32>
    %75 = vector.shape_cast %74 : vector<8xf32> to vector<8x1xf32>
    %cst_42 = arith.constant 3.200000e+01 : f32
    %76 = vector.broadcast %cst_42 : f32 to vector<8x1xf32>
    %77 = arith.divf %75, %76 : vector<8x1xf32>
    %78 = vector.broadcast %77 : vector<8x1xf32> to vector<8x32xf32>
    %79 = arith.subf %71, %78 : vector<8x32xf32>
    %80 = arith.mulf %79, %79 : vector<8x32xf32>
    %cst_43 = arith.constant dense<0.000000e+00> : vector<8xf32>
    %81 = vector.multi_reduction <add>, %80, %cst_43 [1] : vector<8x32xf32> to vector<8xf32>
    %82 = vector.shape_cast %81 : vector<8xf32> to vector<8x1xf32>
    %cst_44 = arith.constant 0.0322580636 : f32
    %83 = vector.broadcast %cst_44 : f32 to vector<8x1xf32>
    %84 = arith.mulf %82, %83 : vector<8x1xf32>
    %85 = math.sqrt %84 : vector<8x1xf32>
    %cst_45 = arith.constant 9.99999996E-13 : f32
    %86 = vector.broadcast %cst_45 : f32 to vector<8x1xf32>
    %87 = arith.addf %85, %86 : vector<8x1xf32>
    %88 = tpu.reciprocal %87 : vector<8x1xf32> -> vector<8x1xf32>
    %89 = vector.broadcast %88 : vector<8x1xf32> to vector<8x32xf32>
    %90 = arith.mulf %79, %89 : vector<8x32xf32>
    %91 = vector.broadcast %72 : vector<1x32xf32> to vector<8x32xf32>
    %92 = arith.mulf %91, %90 : vector<8x32xf32>
    %93 = vector.broadcast %73 : vector<1x32xf32> to vector<8x32xf32>
    %94 = arith.addf %92, %93 : vector<8x32xf32>
    %95 = arith.truncf %94 : vector<8x32xf32> to vector<8x32xbf16>
    %c0_46 = arith.constant 0 : index
    %c0_47 = arith.constant 0 : index
    %96 = vector.load %arg13[%c0_46, %c0_47] : memref<32x64xbf16, #tpu.memory_space<vmem>>, vector<32x64xbf16>
    %cst_48 = arith.constant dense<0.000000e+00> : vector<8x64xf32>
    %97 = tpu.matmul %95, %96, %cst_48 {dimension_numbers = #tpu.dot_dimension_numbers<[1], [0], [0], [1], [0, 0, 1, 1], [], []>} : vector<8x32xbf16>, vector<32x64xbf16>, vector<8x64xf32> -> vector<8x64xf32>
    %c0_49 = arith.constant 0 : index
    %c0_50 = arith.constant 0 : index
    %98 = vector.load %arg14[%c0_49, %c0_50] : memref<1x64xf32, #tpu.memory_space<vmem>>, vector<1x64xf32>
    %99 = vector.broadcast %98 : vector<1x64xf32> to vector<8x64xf32>
    %100 = arith.addf %97, %99 : vector<8x64xf32>
    %cst_51 = arith.constant 0.000000e+00 : f32
    %101 = vector.broadcast %cst_51 : f32 to vector<8x64xf32>
    %102 = arith.maximumf %100, %101 : vector<8x64xf32>
    %103 = arith.truncf %102 : vector<8x64xf32> to vector<8x64xbf16>
    %c0_52 = arith.constant 0 : index
    %c0_53 = arith.constant 0 : index
    %104 = vector.load %arg15[%c0_52, %c0_53] : memref<64x32xbf16, #tpu.memory_space<vmem>>, vector<64x32xbf16>
    %cst_54 = arith.constant dense<0.000000e+00> : vector<8x32xf32>
    %105 = tpu.matmul %103, %104, %cst_54 {dimension_numbers = #tpu.dot_dimension_numbers<[1], [0], [0], [1], [0, 0, 1, 1], [], []>} : vector<8x64xbf16>, vector<64x32xbf16>, vector<8x32xf32> -> vector<8x32xf32>
    %c0_55 = arith.constant 0 : index
    %c0_56 = arith.constant 0 : index
    %106 = vector.load %arg16[%c0_55, %c0_56] : memref<1x32xf32, #tpu.memory_space<vmem>>, vector<1x32xf32>
    %107 = vector.broadcast %106 : vector<1x32xf32> to vector<8x32xf32>
    %108 = arith.addf %105, %107 : vector<8x32xf32>
    %109 = arith.addf %71, %108 : vector<8x32xf32>
    %c0_57 = arith.constant 0 : index
    %c0_58 = arith.constant 0 : index
    %c0_59 = arith.constant 0 : index
    %110 = vector.load %arg21[%c0_57, %c0_58, %c0_59] : memref<1x8x32xf32, #tpu.memory_space<vmem>>, vector<1x8x32xf32>
    %111 = vector.shape_cast %110 : vector<1x8x32xf32> to vector<8x32xf32>
    %112 = vector.shape_cast %109 : vector<8x32xf32> to vector<1x8x32xf32>
    tpu.vector_store %arg21[%c0_57, %c0_58, %c0_59], %112 {strides = array<i32>} : memref<1x8x32xf32, #tpu.memory_space<vmem>>, vector<1x8x32xf32>,
    return
  }
  func.func @transform_0(%arg0: i32, %arg1: i32) -> (i32, i32, i32) {
    %c0_i32 = arith.constant 0 : i32
    %c0_i32_0 = arith.constant 0 : i32
    return %arg0, %arg1, %c0_i32 : i32, i32, i32
  }
  func.func @transform_1(%arg0: i32, %arg1: i32) -> (i32, i32, i32) {
    %c0_i32 = arith.constant 0 : i32
    %c0_i32_0 = arith.constant 0 : i32
    %c0_i32_1 = arith.constant 0 : i32
    return %arg0, %c0_i32, %c0_i32_0 : i32, i32, i32
  }
  func.func @transform_2(%arg0: i32, %arg1: i32) -> (i32, i32, i32) {
    %c0_i32 = arith.constant 0 : i32
    %c0_i32_0 = arith.constant 0 : i32
    %c0_i32_1 = arith.constant 0 : i32
    return %arg0, %c0_i32, %c0_i32_0 : i32, i32, i32
  }
  func.func @transform_3(%arg0: i32, %arg1: i32) -> (i32, i32) {
    %c0_i32 = arith.constant 0 : i32
    %c0_i32_0 = arith.constant 0 : i32
    %c0_i32_1 = arith.constant 0 : i32
    return %c0_i32, %c0_i32_0 : i32, i32
  }
  func.func @transform_4(%arg0: i32, %arg1: i32) -> (i32, i32) {
    %c0_i32 = arith.constant 0 : i32
    %c0_i32_0 = arith.constant 0 : i32
    %c0_i32_1 = arith.constant 0 : i32
    return %c0_i32, %c0_i32_0 : i32, i32
  }
  func.func @transform_5(%arg0: i32, %arg1: i32) -> (i32, i32) {
    %c0_i32 = arith.constant 0 : i32
    %c0_i32_0 = arith.constant 0 : i32
    %c0_i32_1 = arith.constant 0 : i32
    return %c0_i32, %c0_i32_0 : i32, i32
  }
  func.func @transform_6(%arg0: i32, %arg1: i32) -> (i32, i32) {
    %c0_i32 = arith.constant 0 : i32
    %c0_i32_0 = arith.constant 0 : i32
    %c0_i32_1 = arith.constant 0 : i32
    return %c0_i32, %c0_i32_0 : i32, i32
  }
  func.func @transform_7(%arg0: i32, %arg1: i32) -> (i32, i32) {
    %c0_i32 = arith.constant 0 : i32
    %c0_i32_0 = arith.constant 0 : i32
    %c0_i32_1 = arith.constant 0 : i32
    return %c0_i32, %c0_i32_0 : i32, i32
  }
  func.func @transform_8(%arg0: i32, %arg1: i32) -> (i32, i32) {
    %c0_i32 = arith.constant 0 : i32
    %c0_i32_0 = arith.constant 0 : i32
    %c0_i32_1 = arith.constant 0 : i32
    return %c0_i32, %c0_i32_0 : i32, i32
  }
  func.func @transform_9(%arg0: i32, %arg1: i32) -> (i32, i32) {
    %c0_i32 = arith.constant 0 : i32
    %c0_i32_0 = arith.constant 0 : i32
    %c0_i32_1 = arith.constant 0 : i32
    return %c0_i32, %c0_i32_0 : i32, i32
  }
  func.func @transform_10(%arg0: i32, %arg1: i32) -> (i32, i32) {
    %c0_i32 = arith.constant 0 : i32
    %c0_i32_0 = arith.constant 0 : i32
    %c0_i32_1 = arith.constant 0 : i32
    return %c0_i32, %c0_i32_0 : i32, i32
  }
  func.func @transform_11(%arg0: i32, %arg1: i32) -> (i32, i32) {
    %c0_i32 = arith.constant 0 : i32
    %c0_i32_0 = arith.constant 0 : i32
    %c0_i32_1 = arith.constant 0 : i32
    return %c0_i32, %c0_i32_0 : i32, i32
  }
  func.func @transform_12(%arg0: i32, %arg1: i32) -> (i32, i32) {
    %c0_i32 = arith.constant 0 : i32
    %c0_i32_0 = arith.constant 0 : i32
    %c0_i32_1 = arith.constant 0 : i32
    return %c0_i32, %c0_i32_0 : i32, i32
  }
  func.func @transform_13(%arg0: i32, %arg1: i32) -> (i32, i32) {
    %c0_i32 = arith.constant 0 : i32
    %c0_i32_0 = arith.constant 0 : i32
    %c0_i32_1 = arith.constant 0 : i32
    return %c0_i32, %c0_i32_0 : i32, i32
  }
  func.func @transform_14(%arg0: i32, %arg1: i32) -> (i32, i32) {
    %c0_i32 = arith.constant 0 : i32
    %c0_i32_0 = arith.constant 0 : i32
    %c0_i32_1 = arith.constant 0 : i32
    return %c0_i32, %c0_i32_0 : i32, i32
  }
  func.func @transform_15(%arg0: i32, %arg1: i32) -> (i32, i32) {
    %c0_i32 = arith.constant 0 : i32
    %c0_i32_0 = arith.constant 0 : i32
    %c0_i32_1 = arith.constant 0 : i32
    return %c0_i32, %c0_i32_0 : i32, i32
  }
  func.func @transform_16(%arg0: i32, %arg1: i32) -> (i32, i32) {
    %c0_i32 = arith.constant 0 : i32
    %c0_i32_0 = arith.constant 0 : i32
    %c0_i32_1 = arith.constant 0 : i32
    return %c0_i32, %c0_i32_0 : i32, i32
  }
  func.func @transform_17(%arg0: i32, %arg1: i32) -> (i32, i32) {
    %c0_i32 = arith.constant 0 : i32
    %c0_i32_0 = arith.constant 0 : i32
    %c0_i32_1 = arith.constant 0 : i32
    return %c0_i32, %c0_i32_0 : i32, i32
  }
  func.func @transform_18(%arg0: i32, %arg1: i32) -> (i32, i32) {
    %c0_i32 = arith.constant 0 : i32
    %c0_i32_0 = arith.constant 0 : i32
    %c0_i32_1 = arith.constant 0 : i32
    return %c0_i32, %c0_i32_0 : i32, i32
  }
  func.func @transform_19(%arg0: i32, %arg1: i32) -> (i32, i32, i32) {
    %c0_i32 = arith.constant 0 : i32
    %c0_i32_0 = arith.constant 0 : i32
    return %arg0, %arg1, %c0_i32 : i32, i32, i32
  }
}

</mosaic_0001>

<bundles_post_ra>
// kernel: tpu_custom_call.1
= control target key start
LH: loop header
LB: loop body
LE: loop exit
PB: predicated region body
PF: predicated region fallthrough
CT: control target
= control target key end

     0   :  { %s4573_s0 = inlined_call_operand.vmem [shape: f32[2,16,32], index: 0, kind: input, shape index: {}]   ;;  %s4574_s1 = inlined_call_operand.vmem [shape: bf16[2,16,32], index: 1, kind: input, shape index: {}]   ;;  %s4575_s2 = inlined_call_operand.hbm [shape: f32[2,1,16], index: 2, kind: input, shape index: {}]   ;;  %s4576_s3 = inlined_call_operand.hbm [shape: bf16[32,32], index: 3, kind: input, shape index: {}]   ;;  %s4577_s4 = inlined_call_operand.hbm [shape: f32[1,32], index: 4, kind: input, shape index: {}]   ;;  %s4578_s5 = inlined_call_operand.hbm [shape: bf16[32,32], index: 5, kind: input, shape index: {}]   ;;  %s4579_s6 = inlined_call_operand.hbm [shape: f32[1,32], index: 6, kind: input, shape index: {}]   ;;  %s4580_s7 = inlined_call_operand.hbm [shape: bf16[32,32], index: 7, kind: input, shape index: {}]   ;;  %s4581_s8 = inlined_call_operand.hbm [shape: f32[1,32], index: 8, kind: input, shape index: {}]   ;;  %s4582_s9 = inlined_call_operand.vmem [shape: bf16[32,32], index: 9, kind: input, shape index: {}]   ;;  %s4583_s10 = inlined_call_operand.vmem [shape: f32[1,32], index: 10, kind: input, shape index: {}]   ;;  %s4584_s11 = inlined_call_operand.hbm [shape: bf16[32,64], index: 11, kind: input, shape index: {}]   ;;  %s4585_s12 = inlined_call_operand.vmem [shape: f32[1,64], index: 12, kind: input, shape index: {}]   ;;  %s4586_s13 = inlined_call_operand.vmem [shape: bf16[64,32], index: 13, kind: input, shape index: {}]   ;;  %s4587_s14 = inlined_call_operand.vmem [shape: f32[1,32], index: 14, kind: input, shape index: {}]   ;;  %s4588_s15 = inlined_call_operand.vmem [shape: f32[1,32], index: 15, kind: input, shape index: {}]   ;;  %s4589_s16 = inlined_call_operand.vmem [shape: f32[1,32], index: 16, kind: input, shape index: {}]   ;;  %s4590_s17 = inlined_call_operand.vmem [shape: f32[1,32], index: 17, kind: input, shape index: {}]   ;;  %s4591_s18 = inlined_call_operand.vmem [shape: f32[1,32], index: 18, kind: input, shape index: {}]   ;;  %s4592_s19 = inlined_call_operand.hbm [shape: f32[2,16,32], index: 19, kind: output, shape index: {}]  }
   0x1   :  { %4608 = sst [smem:[#allocation32_spill]] %s4573_s0 }
   0x2   :  { %4609 = sst [smem:[#allocation33_spill]] %s4574_s1 }
   0x3   :  { %4610 = sst [smem:[#allocation34_spill]] %s4575_s2 }
   0x4   :  { %4611 = sst [smem:[#allocation35_spill]] %s4576_s3 }
   0x5   :  { %4612 = sst [smem:[#allocation36_spill]] %s4577_s4 }
   0x6   :  { %4613 = sst [smem:[#allocation37_spill]] %s4578_s5 }
   0x7   :  { %4614 = sst [smem:[#allocation38_spill]] %s4579_s6 }
   0x8   :  { %4615 = sst [smem:[#allocation39_spill]] %s4580_s7 }
   0x9   :  { %4616 = sst [smem:[#allocation40_spill]] %s4581_s8 }
   0xa   :  { %4617 = sst [smem:[#allocation41_spill]] %s4582_s9 }
   0xb   :  { %4618 = sst [smem:[#allocation42_spill]] %s4583_s10 }
   0xc   :  { %4619 = sst [smem:[#allocation43_spill]] %s4584_s11 }
   0xd   :  { %4620 = sst [smem:[#allocation44_spill]] %s4585_s12 }
   0xe   :  { %4621 = sst [smem:[#allocation45_spill]] %s4586_s13 }
   0xf   :  { %4622 = sst [smem:[#allocation46_spill]] %s4587_s14 }
  0x10   :  { %4623 = sst [smem:[#allocation47_spill]] %s4588_s15 }
  0x11   :  { %4624 = sst [smem:[#allocation48_spill]] %s4589_s16 }
  0x12   :  { %4625 = sst [smem:[#allocation49_spill]] %s4590_s17 }
  0x13   :  { %4626 = sst [smem:[#allocation50_spill]] %s4591_s18 }
  0x14   :  { %4627 = sst [smem:[#allocation51_spill]] %s4592_s19 }
  0x15   :  { %24 = vsyncpa [#allocation5], 0 }
  0x16   :  { %26 = vsyncpa [#allocation5 + $0x1], 0 }
  0x17   :  { %27 = vsyncpa [#allocation8], 0 }
  0x18   :  { %28 = vsyncpa [#allocation11], 0 }
  0x19   :  { %29 = vsyncpa [#allocation14], 0 }
  0x1a   :  { %30 = vsyncpa [#allocation17], 0 }
  0x1b   :  { %31 = vsyncpa [#allocation6], 0 }
  0x1c   :  { %33 = vsyncpa [#allocation6 + $0x1], 0  ;;  %s3940_s0 = smov 0   ;;  %s3942_s30 = smov 0  }
  0x1d   :  { %s3944_s20 = smov 0   ;;  %s3946_s21 = smov 0  }
  0x1e   :  { %s3948_s1 = smov 0   ;;  %s3950_s22 = smov 0  }
  0x1f   :  { %s3952_s2 = smov 0   ;;  %s3954_s23 = smov 0  }
  0x20   :  { %s3956_s24 = smov 0   ;;  %s3958_s25 = smov 0  }
  0x21   :  { %s3960_s3 = smov 0  }
  0x22 LB: > { %4628 = sst [smem:[#allocation25_spill]] %s3789_s22  ;;  %s4594_s26 = sadd.s32 4294967295, %s3809_s3   ;;  %s3809_s3 = sphi %s3960_s3, %s39_s3   ;;  %s3805_s25 = sphi %s3958_s25, %s4677_s25   ;;  %s3801_s24 = sphi %s3956_s24, %s4676_s24   ;;  %s3797_s23 = sphi %s3954_s23, %s4675_s23   ;;  %s3793_s2 = sphi %s3952_s2, %s4674_s2   ;;  %s3789_s22 = sphi %s3950_s22, %s4673_s22   ;;  %s3785_s1 = sphi %s3948_s1, %s4682_s1   ;;  %s3781_s21 = sphi %s3946_s21, %s4681_s21   ;;  %s3777_s20 = sphi %s3944_s20, %s4680_s20   ;;  %s3773_s30 = sphi %s3942_s30, %s4679_s30   ;;  %s3769_s0 = sphi %s3940_s0, %s4678_s0  }
  0x23   : > { %4629 = sst [smem:[#allocation26_spill]] %s3793_s2  ;;  %p2965_p0 = scmp.ge.s32.totalorder %s3809_s3, 1 }
  0x24   : > { %4630 = sst [smem:[#allocation27_spill]] %s3801_s24  ;;  %p3999_p1 = scmp.eq.s32.totalorder %s4594_s26, 0 }
  0x25   : > { %4631 = sst [smem:[#allocation28_spill]] %s3805_s25  ;;  %p500_p2 = scmp.lt.s32.totalorder %s3809_s3, 5 }
  0x26   : > { %s4632_s27 = scalar_select %p3999_p1, 1, 0 }
  0x27   : > { %p4004_p3 = pnand %p2965_p0, %p500_p2  ;;  %s3811_s29 = smov [#allocation7]  }
  0x28   : > { %s512_s19 = sshll.u32 %s3811_s29, 4  ;;  %s3812_s26 = smov [#allocation10]   ;;  %s513_s19 = int_to_ptr.vmem [resolvable:$true] %s512_s19 }
  0x29   : > { %s4633_s28 = scalar_select %p4004_p3, 1, 0 }
  0x2a   : > { %p3248_p4 = pneg %p4004_p3  ;;  %s536_s12 = sshll.u32 %s3812_s26, 4  ;;  %s537_s12 = int_to_ptr.vmem [resolvable:$true] %s536_s12 }
  0x2b   : > { %s3813_s18 = smov [#allocation13]   ;;  %s3474_s29 = scalar_lea.vmem %s513_s19, 256 }
  0x2c   : > { %p4012_p5 = pnand %p3248_p4, %p3999_p1  ;;  %s560_s17 = sshll.u32 %s3813_s18, 4  ;;  %s561_s17 = int_to_ptr.vmem [resolvable:$true] %s560_s17 }
  0x2d   : > { %p3475_p7 = scmp.ne.s32.totalorder %s513_s19, %s3474_s29  ;;  %p3482_p10 = scmp.lt.s32.totalorder %s513_s19, %s513_s19 }
  0x2e   : > { %p4018_p6 = pneg %p4012_p5  ;;  %p3483_p11 = scmp.lt.s32.totalorder %s3474_s29, %s3474_s29 }
  0x30   : > { %p3477_p8 = pnand %p3475_p7, %p4018_p6  ;;  %p3484_p12 = por %p3483_p11, %p3482_p10 }
  0x32   : > { %p3478_p9 = pneg %p3477_p8 }
  0x34   : > { %p3485_p13 = pnand %p3484_p12, %p3478_p9 }
  0x36   : > { %3488 = shalt.err (!%p3485_p13)
}
  0x37   : > { %s4599_s26 = smov 64   ;;  %s3815_s18 = smov 4  }
  0x38   : > { %s4636_s16 = sld [smem:[#allocation35_spill]]  ;;  %s3500_s15 = scalar_lea.vmem %s537_s12, 256 }
  0x39   : > { %p3501_p0 = scmp.ne.s32.totalorder %s537_s12, %s3500_s15  ;;  %p3508_p7 = scmp.lt.s32.totalorder %s537_s12, %s537_s12 }
  0x3a   : > { %p3509_p8 = scmp.lt.s32.totalorder %s3500_s15, %s3500_s15 }
  0x3b   : > { %p3503_p2 = pnand %p3501_p0, %p4018_p6 }
  0x3c   : > { %p3510_p9 = por %p3509_p8, %p3508_p7 }
  0x3d   : > { %p3504_p4 = pneg %p3503_p2 }
  0x3e   : > { %3251 = dma.hbm_to_vmem [thread:$0]  (!%p4012_p5), %s4636_s16, 256, %s513_s19, [#allocation8], %s4599_s26, %s4599_s26, %s3815_s18  }
  0x3f   : > { %p3511_p10 = pnand %p3510_p9, %p3504_p4 }
  0x41   : > { %3514 = shalt.err (!%p3511_p10)
}
  0x42   : > { %s4637_s5 = sld [smem:[#allocation37_spill]]  ;;  %s3526_s9 = scalar_lea.vmem %s561_s17, 256 }
  0x43   : > { %p3527_p11 = scmp.ne.s32.totalorder %s561_s17, %s3526_s9  ;;  %p3534_p0 = scmp.lt.s32.totalorder %s561_s17, %s561_s17 }
  0x44   : > { %p3535_p2 = scmp.lt.s32.totalorder %s3526_s9, %s3526_s9 }
  0x45   : > { %p3529_p12 = pnand %p3527_p11, %p4018_p6 }
  0x46   : > { %p3536_p4 = por %p3535_p2, %p3534_p0 }
  0x47   : > { %p3530_p13 = pneg %p3529_p12 }
  0x48   : > { %3257 = dma.hbm_to_vmem [thread:$0]  (!%p4012_p5), %s4637_s5, 256, %s537_s12, [#allocation11], %s4599_s26, %s4599_s26, %s3815_s18  }
  0x49   : > { %p3537_p7 = pnand %p3536_p4, %p3530_p13 }
  0x4b   : > { %3540 = shalt.err (!%p3537_p7)
}
  0x4c   : > { %s4638_s7 = sld [smem:[#allocation39_spill]]  ;;  %s3816_s12 = smov [#allocation9]  }
  0x4d   : > { %s526_s16 = sshll.u32 %s3816_s12, 4  ;;  %s3817_s19 = smov [#allocation12]   ;;  %s527_s16 = int_to_ptr.vmem [resolvable:$true] %s526_s16 }
  0x4e   : > { %s550_s2 = sshll.u32 %s3817_s19, 4  ;;  %s3552_s29 = scalar_lea.vmem %s527_s16, 16  ;;  %s551_s2 = int_to_ptr.vmem [resolvable:$true] %s550_s2 }
  0x4f   : > { %p3553_p8 = scmp.ne.s32.totalorder %s527_s16, %s3552_s29  ;;  %s3559_s9 = scalar_lea.vmem %s527_s16, 32 }
  0x50   : > { %p3560_p11 = scmp.lt.s32.totalorder %s527_s16, %s527_s16  ;;  %p3561_p12 = scmp.lt.s32.totalorder %s3559_s9, %s3552_s29 }
  0x51   : > { %p3555_p9 = pnand %p3553_p8, %p4018_p6 }
  0x52   : > { %3263 = dma.hbm_to_vmem [thread:$0]  (!%p4012_p5), %s4638_s7, 256, %s561_s17, [#allocation14], %s4599_s26, %s4599_s26, %s3815_s18  }
  0x53   : > { %p3556_p10 = pneg %p3555_p9  ;;  %p3562_p13 = por %p3561_p12, %p3560_p11 }
  0x55   : > { %p3563_p0 = pnand %p3562_p13, %p3556_p10 }
  0x57   : > { %3566 = shalt.err (!%p3563_p0)
}
  0x58   : > { %s4639_s4 = sld [smem:[#allocation36_spill]]  ;;  %s3578_s15 = scalar_lea.vmem %s551_s2, 16 }
  0x59   : > { %p3579_p2 = scmp.ne.s32.totalorder %s551_s2, %s3578_s15  ;;  %s3585_s12 = scalar_lea.vmem %s551_s2, 32 }
  0x5a   : > { %p3586_p8 = scmp.lt.s32.totalorder %s551_s2, %s551_s2  ;;  %p3587_p9 = scmp.lt.s32.totalorder %s3585_s12, %s3578_s15 }
  0x5b   : > { %p3581_p4 = pnand %p3579_p2, %p4018_p6 }
  0x5c   : > { %p3588_p3 = por %p3587_p9, %p3586_p8 }
  0x5d   : > { %p3582_p7 = pneg %p3581_p4 }
  0x5e   : > { %3254 = dma.hbm_to_vmem [thread:$0]  (!%p4012_p5), %s4639_s4, 16, %s527_s16, [#allocation8]  }
  0x5f   : > { %p3589_p11 = pnand %p3588_p3, %p3582_p7 }
  0x61   : > { %3592 = shalt.err (!%p3589_p11)
}
  0x62   : > { %s4640_s6 = sld [smem:[#allocation38_spill]]  ;;  %s3818_s16 = smov [#allocation15]  }
  0x63   : > { %s574_s9 = sshll.u32 %s3818_s16, 4  ;;  %s3819_s10 = smov [#allocation16]   ;;  %s575_s9 = int_to_ptr.vmem [resolvable:$true] %s574_s9 }
  0x64   : > { %s590_s17 = sshll.u32 %s3819_s10, 4  ;;  %s3604_s26 = scalar_lea.vmem %s575_s9, 16  ;;  %s591_s17 = int_to_ptr.vmem [resolvable:$true] %s590_s17 }
  0x65   : > { %p3605_p10 = scmp.ne.s32.totalorder %s575_s9, %s3604_s26  ;;  %s3611_s15 = scalar_lea.vmem %s575_s9, 32 }
  0x66   : > { %p3612_p3 = scmp.lt.s32.totalorder %s575_s9, %s575_s9  ;;  %p3613_p0 = scmp.lt.s32.totalorder %s3611_s15, %s3604_s26 }
  0x67   : > { %p3607_p12 = pnand %p3605_p10, %p4018_p6 }
  0x68   : > { %3260 = dma.hbm_to_vmem [thread:$0]  (!%p4012_p5), %s4640_s6, 16, %s551_s2, [#allocation11]  }
  0x69   : > { %p3608_p13 = pneg %p3607_p12  ;;  %p3614_p2 = por %p3613_p0, %p3612_p3 }
  0x6b   : > { %p3615_p4 = pnand %p3614_p2, %p3608_p13 }
  0x6d   : > { %3618 = shalt.err (!%p3615_p4)
}
  0x6e   : > { %s4641_s8 = sld [smem:[#allocation40_spill]]  ;;  %s3630_s19 = scalar_lea.vmem %s591_s17, 256 }
  0x6f   : > { %p3631_p7 = scmp.ne.s32.totalorder %s591_s17, %s3630_s19  ;;  %p3638_p11 = scmp.lt.s32.totalorder %s591_s17, %s591_s17 }
  0x70   : > { %p3639_p10 = scmp.lt.s32.totalorder %s3630_s19, %s3630_s19 }
  0x71   : > { %p3633_p8 = pnand %p3631_p7, %p4018_p6 }
  0x72   : > { %p3640_p12 = por %p3639_p10, %p3638_p11 }
  0x73   : > { %p3634_p9 = pneg %p3633_p8 }
  0x74   : > { %3266 = dma.hbm_to_vmem [thread:$0]  (!%p4012_p5), %s4641_s8, 16, %s575_s9, [#allocation14]  }
  0x75   : > { %p3641_p1 = pnand %p3640_p12, %p3634_p9 }
  0x77   : > { %3644 = shalt.err (!%p3641_p1)
}
  0x78   : > { %s4642_s26 = smov 64   ;;  %s4643_s11 = sld [smem:[#allocation43_spill]] }
  0x79   : > { %s2964_s13 = sadd.s32 4294967294, %s3809_s3   ;;  %s48_s14 = sadd.s32 1, %s3801_s24 }
  0x7a   : > { %s51_s9 = sadd.s32 1, %s3805_s25  ;;  %p49_p1 = scmp.ge.s32.totalorder %s48_s14, 2 }
  0x7b   : > { %s112_s10 = sadd.s32 1, %s3789_s22  ;;  %p119_p6 = scmp.ne.s32.totalorder %s3789_s22, %s3785_s1 }
  0x7c   : > { %p120_p13 = scmp.eq.s32.totalorder %s3809_s3, 0  ;;  %s4684_s14 = smov (%p49_p1, %s48_s14), 0 }
  0x7d   : > { %4644 = sst [smem:[#allocation29_spill]] %s4684_s14  ;;  %s4686_s9 = smov (!%p49_p1, %s51_s9), %s3805_s25 }
  0x7e   : > { %3269 = dma.hbm_to_vmem [thread:$0]  (!%p4012_p5), %s4643_s11, 256, %s591_s17, [#allocation17], %s4642_s26, %s4642_s26, %s3815_s18  }
  0x7f   : > { %p4093_p3 = por %p120_p13, %p119_p6  ;;  %p125_p5 = scmp.ne.s32.totalorder %s3785_s1, %s3781_s21 }
  0x80   : > { %p53_p0 = scmp.ge.s32.totalorder %s4686_s9, 2  ;;  %s472_s17 = ssub.s32 %s3801_s24, %s4684_s14 }
  0x81   : > { %p4646_p2 = scmp.ne.s32.totalorder %s4632_s27, 0  ;;  %s476_s12 = sadd.s32 1, %s3777_s20 }
  0x82   : > { %s4688_s9 = smov (%p53_p0, %s4686_s9), 0  ;;  %p486_p7 = scmp.ne.s32.totalorder %s3777_s20, %s3773_s30 }
  0x83   : > { %p4103_p4 = por %p4646_p2, %p125_p5  ;;  %4648 = sst [smem:[#allocation30_spill]] %s4688_s9 }
  0x84   : > { %s4649_s2 = sadd.s32 4294967295, %s3809_s3   ;;  %s109_s19 = ssub.s32 %s3805_s25, %s4688_s9 }
  0x85   : > { %p487_p8 = scmp.eq.s32.totalorder %s4649_s2, 3  ;;  %p492_p9 = scmp.ne.s32.totalorder %s3773_s30, %s3769_s0 }
  0x86   : > { %p110_p11 = scmp.eq.s32.totalorder %s109_s19, 0  ;;  %s473_s21 = sor.u32 %s472_s17, %s109_s19 }
  0x87   : > { %p474_p10 = scmp.eq.s32.totalorder %s473_s21, 0  ;;  %p4118_p12 = por %p487_p8, %p486_p7 }
  0x88   : > { %s4123_s29 = scalar_select %p110_p11, %s3789_s22, %s112_s10  }
  0x89   : > { %s4126_s16 = scalar_select %p474_p10, %s3777_s20, %s476_s12  }
  0x8a   : > { %4651 = sst [smem:[#allocation31_spill]] %s4123_s29  ;;  %p493_p1 = scmp.eq.s32.totalorder %s2964_s13, 3 }
  0x8b   : > { %p3285_p6 = scmp.lt.s32.totalorder %s3809_s3, 4  ;;  %s644_s4 = sand.u32 1, %s3789_s22  }
  0x8c   : > { %s2974_s5 = sshll.u32 %s3805_s25, 4  ;;  %p4131_p13 = por %p493_p1, %p492_p9 }
  0x8d   : > { %s4653_s17 = sld [smem:[#allocation34_spill]]  ;;  %s647_s21 = scalar_lea.vmem [#allocation4], %s644_s4 }
  0x8e   : > { %s654_s8 = sshll.u32 %s647_s21, 4  ;;  %p4140_p5 = pnand %p3285_p6, %p4093_p3  ;;  %s655_s8 = int_to_ptr.vmem [resolvable:$true] %s654_s8 }
  0x8f   : > { %s645_s13 = scalar_lea.sflag [#allocation5], %s644_s4  ;;  %s3658_s12 = scalar_lea.vmem %s655_s8, 16 }
  0x90   : > { %p3647_p0 = pneg %p4140_p5  ;;  %p3659_p2 = scmp.ne.s32.totalorder %s655_s8, %s3658_s12 }
  0x91   : > { %s3820_s11 = smov [#allocation4]  }
  0x92   : > { %p3661_p7 = pnand %p3659_p2, %p3647_p0  ;;  %s3663_s9 = sshll.u32 %s3820_s11, 4  ;;  %s3664_s9 = int_to_ptr.vmem [resolvable:$false] %s3663_s9 }
  0x93   : > { %s652_s19 = scalar_lea.hbm %s4653_s17, %s2974_s5  ;;  %s3665_s5 = scalar_lea.vmem %s3664_s9, 32 }
  0x94   : > { %p3662_p8 = pneg %p3661_p7  ;;  %p3666_p9 = scmp.lt.s32.totalorder %s655_s8, %s3664_s9 }
  0x95   : > { %p3667_p11 = scmp.lt.s32.totalorder %s3665_s5, %s3658_s12 }
  0x97   : > { %p3668_p10 = por %p3667_p11, %p3666_p9 }
  0x99   : > { %p3669_p3 = pnand %p3668_p10, %p3662_p8 }
  0x9b   : > { %3672 = shalt.err (!%p3669_p3)
}
  0x9c   : > { %3273 = dma.hbm_to_vmem [thread:$0]  (!%p4140_p5), %s652_s19, 16, %s655_s8, %s645_s13  }
  0x9d   : > { %p4655_p1 = scmp.ne.s32.totalorder %s4633_s28, 0 }
  0x9e   : > { %s665_s4 = sand.u32 (!%p4655_p1), 1, %s3785_s1  }
  0x9f   : > { %663 = sbr.rel (%p4655_p1) target bundleno = 3355 (0xd1b), region = 96  ;;  %s666_s6 = scalar_lea.sflag (!%p4655_p1), [#allocation5], %s665_s4 }
  0xa0   : > { %s4151_s7 = scalar_lea.vmem (!%p4655_p1), [#allocation4], %s665_s4 }
  0xa4   : > { %3744 = dma.done.wait (%p4103_p4), %s666_s6, 16  }
  0xa5   : > { %3746 = vsyncadd (%p4103_p4), %s666_s6, 4294967280  ;;  %p4656_p6 = scmp.ne.s32.totalorder %s4632_s27, 0 }
  0xa7   : > { %3748 = dma.done.wait (%p4656_p6), [#allocation8], 272  }
  0xa8   : > { %3750 = vsyncadd (%p4656_p6), [#allocation8], 4294967024 }
  0xa9   : > { %3752 = dma.done.wait (%p4656_p6), [#allocation11], 272  }
  0xaa   : > { %3754 = vsyncadd (%p4656_p6), [#allocation11], 4294967024 }
  0xab   : > { %3756 = dma.done.wait (%p4656_p6), [#allocation14], 272  }
  0xac   : > { %3758 = vsyncadd (%p4656_p6), [#allocation14], 4294967024 }
  0xad   : > { %3760 = dma.done.wait (%p4656_p6), [#allocation17], 256  }
  0xae   : > { %3762 = vsyncadd (%p4656_p6), [#allocation17], 4294967040  ;;  %s4657_s8 = sld [smem:[#allocation26_spill]]  ;;  %s4604_s11 = sand.u32 1, %s3773_s30  }
  0xaf   : > { %p763_p4 = scmp.lt.s32.totalorder %s3797_s23, 1  ;;  %s4177_s28 = sshll.u32 %s4604_s11, 3 }
  0xb0   : > { %s4658_s10 = sld [smem:[#allocation33_spill]] }
  0xb1   : > { %s764_s9 = scalar_select %p763_p4, %s3797_s23, 1 }
  0xb2   : > { %s4659_s4 = sld [smem:[#allocation47_spill]] }
  0xb3   : > { %s2984_s15 = sshll.u32 %s764_s9, 1  ;;  %s3075_s17 = sshll.u32 %s764_s9, 3 }
  0xb4   : > { %p765_p5 = scmp.lt.s32.totalorder %s4657_s8, 1  ;;  %s4660_s11 = sld [smem:[#allocation48_spill]] }
  0xb5   : > { %s4661_s22 = sld [smem:[#allocation32_spill]]  ;;  %p2988_p0 = scmp.ne.s32.totalorder %s4657_s8, 0 }
  0xb6   : > { %s766_s18 = scalar_select %p765_p5, %s4657_s8, 1 }
  0xb7   : > { %s775_s13 = scalar_lea.vmem %s4658_s10, %s3075_s17  ;;  %782 = sbr.rel (%p2988_p0) target bundleno = 894 (0x37e), region = 132 }
  0xb8   : > { %s768_s19 = sadd.s32 %s2984_s15, %s766_s18  ;;  %v4188_v0 = vld [vmem:[%s4659_s4] sm:$0x1]  ;;  %s762_s18 = scalar_lea.vmem [#allocation18], %s4177_s28 }
  0xb9   : > { %s2985_s25 = sshll.u32 %s768_s19, 3  ;;  %s3824_s24 = smov (!%p2988_p0), 120  }
  0xba   : > { %v4193_v1 = vld [vmem:[%s4660_s11] sm:$0x1] }
  0xbb   : > { %s4198_s9 = scalar_lea.vmem %s4661_s22, %s2985_s25  ;;  %s3823_s22 = smov (!%p2988_p0), 112  }
  0xbc   : > { %v3077_v2 = vld [vmem:[%s775_s13] sm:$0xff]   ;;  %vm787_vm0 = vcmask 261120   ;;  %v3410_v18 = vld [vmem:[#allocation13 + $0x8] sm:$0xff]   ;;  %v3821_v19 = vmov 0.0   ;;  %vm3822_vm1 = vmmov 0   ;;  %v830_v38 = vlaneseq  ;;  %s3825_s25 = smov 104  }
  0xbd   : > { %v3078_v3 = vunpack.c.l.bf16 %v3077_v2  ;;  %v3079_v4 = vunpack.c.h.bf16 %v3077_v2  ;;  %v3409_v17 = vld [vmem:[#allocation10 + $0x8] sm:$0xff]   ;;  %3116 = vmatprep.subr.bf16.mxu0 %v3821_v19  ;;  %3124 = vmatprep.subr.bf16.mxu1 %v3821_v19  ;;  %v3411_v20 = vld [vmem:[#allocation10] sm:$0xff]   ;;  %v3412_v21 = vld [vmem:[#allocation13] sm:$0xff]   ;;  %vm1285_vm6 = vcmask 60416  }
  0xbe   : > { %3117 = vmatpush3.bf16.msra.mxu0 %v3409_v17  ;;  %3125 = vmatpush3.bf16.msra.mxu1 %v3410_v18  ;;  %v831_v39 = vshrl.u32 %v830_v38, 7  ;;  %v2989_v52 = vld [vmem:[#allocation12] ss:$0 sm:$0xff]  ;;  %v2993_v61 = vld [vmem:[#allocation15] ss:$0 sm:$0xff] }
  0xbf   : > { %v788_v5 = vsel %vm787_vm0, %v3078_v3, 0.0  ;;  %v791_v6 = vsel %vm787_vm0, %v3079_v4, 0.0  ;;  %3118 = vmatprep.subr.bf16.mxu0 %v3821_v19  ;;  %3126 = vmatprep.subr.bf16.mxu1 %v3821_v19 }
  0xc0   : > { %789 = vadd.xlane.f32.xlu0 %v788_v5  ;;  %3120 = vmatprep.mubr.msk.bf16.mxu0 %vm3822_vm1, %v3821_v19  ;;  %v832_v40 = vsub.s32 0, %v831_v39 }
  0xc1   : > { %3128 = vmatprep.mubr.msk.bf16.mxu1 %vm3822_vm1, %v3821_v19 }
  0xc2   : > { %3119 = vmatpush3.bf16.msra.mxu0 %v3411_v20  ;;  %3127 = vmatpush3.bf16.msra.mxu1 %v3412_v21  ;;  %v833_v43 = vrot.slane %v4188_v0, %v832_v40  ;;  %v841_v47 = vrot.slane %v4193_v1, %v832_v40 }
  0xc4   : > { %792 = vadd.xlane.f32.xlu0 %v791_v6  ;;  %v3827_v6 = vmov 1934713408  }
 0x149   : > { %v790_v7 = vpop.xlane.xlu0 %789 }
 0x14a   : > { %v795_v8 = vmul.f32 0.03125, %v790_v7  ;;  %v1032_v7 = vunpack.c.l.s4 %v3827_v6 }
 0x14c   : > { %v797_v9 = vsub.f32 %v3078_v3, %v795_v8 }
 0x14d   : > { %v793_v10 = vpop.xlane.xlu0 %792 }
 0x14e   : > { %v796_v11 = vmul.f32 0.03125, %v793_v10  ;;  %v799_v12 = vmul.f32 %v797_v9, %v797_v9 }
 0x150   : > { %v798_v13 = vsub.f32 %v3079_v4, %v796_v11  ;;  %v801_v14 = vsel %vm787_vm0, %v799_v12, 0.0  ;;  %v3826_v4 = vmov 1983009808   ;;  %v1033_v11 = vunpack.c.0.s8 %v1032_v7 }
 0x151   : > { %802 = vadd.xlane.f32.xlu1 %v801_v14  ;;  %v1000_v5 = vunpack.c.l.s4 %v3826_v4 }
 0x152   : > { %v800_v15 = vmul.f32 %v798_v13, %v798_v13  ;;  %v4233_v20 = vsub.s32 %v1033_v11, %v831_v39 }
 0x153   : > { %v1001_v8 = vunpack.c.0.s8 %v1000_v5 }
 0x154   : > { %v804_v16 = vsel %vm787_vm0, %v800_v15, 0.0 }
 0x155   : > { %805 = vadd.xlane.f32.xlu1 %v804_v16  ;;  %v4231_v12 = vsub.s32 %v1001_v8, %v831_v39 }
 0x1da   : > { %v803_v22 = vpop.xlane.xlu1 %802 }
 0x1db   : > { %v807_v23 = vmul.f32 0.032258064, %v803_v22 }
 0x1dd   : > { %3413 = vrsqrt.f32 %v807_v23  ;;  %vm811_vm2 = vcmp.eq.f32.partialorder %v807_v23, inf  ;;  %v814_v28 = vand.u32 2147483648, %v807_v23  ;;  %vm813_vm3 = vcmp.eq.f32.partialorder %v807_v23, 0.0 }
 0x1de   : > { %v806_v24 = vpop.xlane.xlu1 %805 }
 0x1df   : > { %v808_v25 = vmul.f32 0.032258064, %v806_v24 }
 0x1e1   : > { %3415 = vrsqrt.f32 %v808_v25  ;;  %vm818_vm4 = vcmp.eq.f32.partialorder %v808_v25, inf  ;;  %v821_v34 = vand.u32 2147483648, %v808_v25  ;;  %vm820_vm5 = vcmp.eq.f32.partialorder %v808_v25, 0.0 }
 0x1ea   : > { %v3414_v26 = vpop.eup %3413 }
 0x1eb   : > { %v810_v27 = vmul.f32 %v3414_v26, %v807_v23 }
 0x1ed   : > { %v812_v29 = vsel %vm811_vm2, %v807_v23, %v810_v27 }
 0x1ee   : > { %v3416_v30 = vpop.eup %3415  ;;  %v815_v31 = vsel %vm813_vm3, %v814_v28, %v812_v29 }
 0x1ef   : > { %v823_v32 = vadd.f32 1e-12, %v815_v31  ;;  %v817_v33 = vmul.f32 %v3416_v30, %v808_v25 }
 0x1f1   : > { %3417 = vrcp.f32 %v823_v32  ;;  %v819_v35 = vsel %vm818_vm4, %v808_v25, %v817_v33 }
 0x1f2   : > { %v822_v36 = vsel %vm820_vm5, %v821_v34, %v819_v35 }
 0x1f3   : > { %v824_v37 = vadd.f32 1e-12, %v822_v36 }
 0x1f5   : > { %3419 = vrcp.f32 %v824_v37 }
 0x1fe   : > { %v3418_v41 = vpop.eup %3417 }
 0x1ff   : > { %v827_v42 = vmul.f32 %v3418_v41, %v797_v9 }
 0x201   : > { %v835_v46 = vmul.f32 %v833_v43, %v827_v42 }
 0x202   : > { %v3420_v44 = vpop.eup %3419 }
 0x203   : > { %v828_v45 = vmul.f32 %v3420_v44, %v798_v13  ;;  %v843_v49 = vadd.f32 %v841_v47, %v835_v46 }
 0x205   : > { %v836_v48 = vmul.f32 %v833_v43, %v828_v45 }
 0x207   : > { %v844_v50 = vadd.f32 %v841_v47, %v836_v48 }
 0x209   : > { %v845_v51 = vpack.c.bf16 %v844_v50, %v843_v49 }
 0x20b   : > { %3121 = vmatmul.mubr.msk.bf16.vlgmr.msra.gmra.mxu0 %vm787_vm0, %v845_v51  ;;  %3129 = vmatmul.mubr.msk.bf16.vlgmr.msra.gmra.mxu1 %vm787_vm0, %v845_v51 }
 0x2cb   : > { %v906_v53 = vpop.f32.mrf.mxu0  ;;  %v970_v54 = vpop.f32.mrf.mxu1 }
 0x2cc   : > { %v907_v55 = vadd.f32 %v2989_v52, %v906_v53  ;;  %v4219_v2 = vadd.f32 %v2993_v61, %v970_v54 }
 0x2cd   : > { %v3122_v56 = vpop.f32.mrf.mxu0  ;;  %v3130_v57 = vpop.f32.mrf.mxu1 }
 0x2ce   : > { %985 = vrot.lane.b32.xlu1 %v907_v55, %s3823_s22  ;;  %979 = vrot.lane.b32.xlu0 %v907_v55, %s3824_s24 }
 0x2cf   : > { %v909_v58 = vpop.f32.mrf.mxu0  ;;  %v973_v59 = vpop.f32.mrf.mxu1 }
 0x2d0   : > { %v4216_v60 = vadd.f32 %v2989_v52, %v909_v58  ;;  %v4225_v3 = vadd.f32 %v2993_v61, %v973_v59 }
 0x2d1   : > { %v3123_v62 = vpop.f32.mrf.mxu0  ;;  %v3131_v63 = vpop.f32.mrf.mxu1 }
 0x2d2   : > { %991 = vrot.lane.b32.xlu0 %v907_v55, %s3825_s25  ;;  %981 = vrot.lane.b32.xlu1 %v4216_v60, %s3824_s24 }
 0x2d6   : > { %1296 = vrot.lane.b32.xlu0 %v4219_v2, %s3824_s24  ;;  %987 = vrot.lane.b32.xlu1 %v4216_v60, %s3823_s22 }
 0x2da   : > { %1302 = vrot.lane.b32.xlu0 %v4219_v2, %s3823_s22  ;;  %993 = vrot.lane.b32.xlu1 %v4216_v60, %s3825_s25 }
 0x2de   : > { %1308 = vrot.lane.b32.xlu0 %v4219_v2, %s3825_s25  ;;  %1298 = vrot.lane.b32.xlu1 %v4225_v3, %s3824_s24 }
 0x2e2   : > { %1304 = vrot.lane.b32.xlu1 %v4225_v3, %s3823_s22 }
 0x2e6   : > { %1310 = vrot.lane.b32.xlu1 %v4225_v3, %s3825_s25 }
 0x340   : > { %v986_v9 = vpop.permute.xlu1 %985  ;;  %v980_v10 = vpop.permute.xlu0 %979 }
 0x341   : > { %v997_v13 = vcombine.low %v907_v55, %v986_v9  ;;  %v998_v14 = vcombine.high %v907_v55, %v986_v9 }
 0x343   : > { %v1005_v21 = vrot.slane %v997_v13, %v4231_v12  ;;  %v1012_v22 = vrot.slane %v998_v14, %v4231_v12 }
 0x344   : > { %v992_v15 = vpop.permute.xlu0 %991  ;;  %v982_v16 = vpop.permute.xlu1 %981 }
 0x345   : > { %v1013_v17 = vcombine.low %v980_v10, %v992_v15  ;;  %v1014_v18 = vcombine.high %v980_v10, %v992_v15 }
 0x347   : > { %v1021_v23 = vrot.slane %v1013_v17, %v4231_v12  ;;  %v1028_v24 = vrot.slane %v1014_v18, %v4231_v12 }
 0x348   : > { %v1297_v25 = vpop.permute.xlu0 %1296  ;;  %v988_v26 = vpop.permute.xlu1 %987 }
 0x349   : > { %v1029_v27 = vcombine.low %v1005_v21, %v1021_v23  ;;  %v1030_v28 = vcombine.high %v1005_v21, %v1021_v23  ;;  %v1045_v29 = vcombine.low %v1012_v22, %v1028_v24  ;;  %v1046_v30 = vcombine.high %v1012_v22, %v1028_v24 }
 0x34a   : > { %v1065_v35 = vcombine.low %v4216_v60, %v988_v26  ;;  %v1066_v36 = vcombine.high %v4216_v60, %v988_v26 }
 0x34b   : > { %v1037_v31 = vrot.slane %v1029_v27, %v4233_v20  ;;  %v1044_v32 = vrot.slane %v1030_v28, %v4233_v20  ;;  %v1053_v33 = vrot.slane %v1045_v29, %v4233_v20  ;;  %v1060_v34 = vrot.slane %v1046_v30, %v4233_v20 }
 0x34c   : > { %v1303_v37 = vpop.permute.xlu0 %1302  ;;  %v994_v38 = vpop.permute.xlu1 %993  ;;  %v1073_v50 = vrot.slane %v1065_v35, %v4231_v12  ;;  %v1080_v51 = vrot.slane %v1066_v36, %v4231_v12 }
 0x34d   : > { %v1061_v39 = vcombine.high %v1037_v31, %v3821_v19  ;;  %v1062_v40 = vcombine.high %v1044_v32, %v3821_v19  ;;  %v1063_v41 = vcombine.high %v1053_v33, %v3821_v19  ;;  %v1064_v42 = vcombine.high %v1060_v34, %v3821_v19 }
 0x34e   : > { %v2997_v43 = vpack.c.bf16 %v1053_v33, %v1037_v31  ;;  %v2998_v44 = vpack.c.bf16 %v1060_v34, %v1044_v32  ;;  %v1314_v45 = vcombine.low %v4219_v2, %v1303_v37  ;;  %v1315_v46 = vcombine.high %v4219_v2, %v1303_v37 }
 0x34f   : > { %v1081_v47 = vcombine.low %v982_v16, %v994_v38  ;;  %v1082_v48 = vcombine.high %v982_v16, %v994_v38  ;;  %v3001_v49 = vpack.c.bf16 %v1063_v41, %v1061_v39  ;;  %v3002_v55 = vpack.c.bf16 %v1064_v42, %v1062_v40 }
 0x350   : > { %v1309_v52 = vpop.permute.xlu0 %1308  ;;  %v4253_v53 = vpop.permute.xlu1 %1298  ;;  %v1156_v54 = vrot.slane %v2997_v43, %v4231_v12  ;;  %v1164_v58 = vrot.slane %v2998_v44, %v4231_v12  ;;  %v1322_v59 = vrot.slane %v1314_v45, %v4231_v12  ;;  %v1329_v62 = vrot.slane %v1315_v46, %v4231_v12 }
 0x351   : > { %v1089_v56 = vrot.slane %v1081_v47, %v4231_v12  ;;  %v1096_v57 = vrot.slane %v1082_v48, %v4231_v12  ;;  %v1330_v60 = vcombine.low %v1297_v25, %v1309_v52  ;;  %v1331_v61 = vcombine.high %v1297_v25, %v1309_v52 }
 0x352   : > { %v1206_v5 = vrot.slane %v3001_v49, %v4231_v12  ;;  %v1214_v9 = vrot.slane %v3002_v55, %v4231_v12  ;;  %v1181_v25 = vcombine.low %v1156_v54, %v1164_v58 }
 0x353   : > { %v1097_v63 = vcombine.low %v1073_v50, %v1089_v56  ;;  %v1098_v2 = vcombine.high %v1073_v50, %v1089_v56  ;;  %v1113_v4 = vcombine.low %v1080_v51, %v1096_v57  ;;  %v1114_v6 = vcombine.high %v1080_v51, %v1096_v57 }
 0x354   : > { %v1338_v7 = vrot.slane %v1330_v60, %v4231_v12  ;;  %v1345_v8 = vrot.slane %v1331_v61, %v4231_v12  ;;  %v1305_v18 = vpop.permute.xlu1 %1304  ;;  %v1231_v36 = vcombine.low %v1206_v5, %v1214_v9  ;;  %v1188_v39 = vrot.slane %v1181_v25, %v4233_v20 }
 0x355   : > { %v1105_v10 = vrot.slane %v1097_v63, %v4233_v20  ;;  %v1112_v11 = vrot.slane %v1098_v2, %v4233_v20  ;;  %v1121_v13 = vrot.slane %v1113_v4, %v4233_v20  ;;  %v1128_v14 = vrot.slane %v1114_v6, %v4233_v20 }
 0x356   : > { %v1346_v15 = vcombine.low %v1322_v59, %v1338_v7  ;;  %v1347_v16 = vcombine.high %v1322_v59, %v1338_v7  ;;  %v1362_v17 = vcombine.low %v1329_v62, %v1345_v8  ;;  %v1363_v31 = vcombine.high %v1329_v62, %v1345_v8 }
 0x357   : > { %v1129_v21 = vcombine.high %v1105_v10, %v3821_v19  ;;  %v1130_v22 = vcombine.high %v1112_v11, %v3821_v19  ;;  %v1131_v23 = vcombine.high %v1121_v13, %v3821_v19  ;;  %v2999_v24 = vpack.c.bf16 %v1121_v13, %v1105_v10 }
 0x358   : > { %v1132_v26 = vcombine.high %v1128_v14, %v3821_v19  ;;  %v3000_v27 = vpack.c.bf16 %v1128_v14, %v1112_v11  ;;  %v1354_v28 = vrot.slane %v1346_v15, %v4233_v20  ;;  %v1370_v32 = vrot.slane %v1362_v17, %v4233_v20  ;;  %v1311_v42 = vpop.permute.xlu1 %1310 }
 0x359   : > { %v1172_v29 = vrot.slane %v2999_v24, %v4231_v12  ;;  %v3003_v30 = vpack.c.bf16 %v1131_v23, %v1129_v21  ;;  %v1361_v35 = vrot.slane %v1347_v16, %v4233_v20  ;;  %v1377_v38 = vrot.slane %v1363_v31, %v4233_v20 }
 0x35a   : > { %v1180_v33 = vrot.slane %v3000_v27, %v4231_v12  ;;  %v3004_v34 = vpack.c.bf16 %v1132_v26, %v1130_v22  ;;  %v1378_v43 = vcombine.high %v1354_v28, %v3821_v19  ;;  %v1380_v44 = vcombine.high %v1370_v32, %v3821_v19 }
 0x35b   : > { %v1222_v37 = vrot.slane %v3003_v30, %v4231_v12  ;;  %v3013_v45 = vpack.c.bf16 %v1370_v32, %v1354_v28  ;;  %v1382_v46 = vcombine.low %v4225_v3, %v1305_v18  ;;  %v3014_v49 = vpack.c.bf16 %v1377_v38, %v1361_v35 }
 0x35c   : > { %v1189_v40 = vcombine.low %v1172_v29, %v1180_v33  ;;  %v1230_v41 = vrot.slane %v3004_v34, %v4231_v12  ;;  %v1383_v50 = vcombine.high %v4225_v3, %v1305_v18  ;;  %v1238_v51 = vrot.slane %v1231_v36, %v4233_v20 }
 0x35d   : > { %v1379_v52 = vcombine.high %v1361_v35, %v3821_v19  ;;  %v1381_v54 = vcombine.high %v1377_v38, %v3821_v19  ;;  %v1398_v55 = vcombine.low %v4253_v53, %v1311_v42  ;;  %v1399_v59 = vcombine.high %v4253_v53, %v1311_v42 }
 0x35e   : > { %v1196_v47 = vrot.slane %v1189_v40, %v4233_v20  ;;  %v1239_v48 = vcombine.low %v1222_v37, %v1230_v41  ;;  %v1473_v60 = vrot.slane %v3013_v45, %v4231_v12  ;;  %v3017_v61 = vpack.c.bf16 %v1380_v44, %v1378_v43 }
 0x35f   : > { %v1390_v62 = vrot.slane %v1382_v46, %v4231_v12  ;;  %v1406_v3 = vrot.slane %v1398_v55, %v4231_v12  ;;  %v1481_v4 = vrot.slane %v3014_v49, %v4231_v12  ;;  %v1397_v5 = vrot.slane %v1383_v50, %v4231_v12 }
 0x360   : > { %v1197_v56 = vcombine.low %v1188_v39, %v1196_v47  ;;  %v1198_v57 = vcombine.high %v1188_v39, %v1196_v47  ;;  %v1246_v58 = vrot.slane %v1239_v48, %v4233_v20  ;;  %v1413_v8 = vrot.slane %v1399_v59, %v4231_v12 }
 0x361   : > { %v1414_v9 = vcombine.low %v1390_v62, %v1406_v3  ;;  %v3018_v14 = vpack.c.bf16 %v1381_v54, %v1379_v52  ;;  %v1415_v15 = vcombine.high %v1390_v62, %v1406_v3  ;;  %v1523_v36 = vrot.slane %v3017_v61, %v4231_v12 }
 0x362   : > { %v1247_v63 = vcombine.low %v1238_v51, %v1246_v58  ;;  %v1248_v2 = vcombine.high %v1238_v51, %v1246_v58  ;;  %v1252_v6 = vshrl.u32 %v1197_v56, 16  ;;  %v1258_v7 = vshrl.u32 %v1198_v57, 16 }
 0x363   : > { %v1422_v16 = vrot.slane %v1414_v9, %v4233_v20  ;;  %v1430_v17 = vcombine.low %v1397_v5, %v1413_v8  ;;  %v1429_v26 = vrot.slane %v1415_v15, %v4233_v20  ;;  %v1431_v27 = vcombine.high %v1397_v5, %v1413_v8 }
 0x364   : > { %v1251_v10 = vpack.i.b16 %v1247_v63, %v1197_v56  ;;  %v1253_v53 = vshrl.u32 %v1247_v63, 16  ;;  %v1257_v11 = vpack.i.b16 %v1248_v2, %v1198_v57  ;;  %v1259_v13 = vshrl.u32 %v1248_v2, 16 }
 0x365   : > { %v1438_v32 = vrot.slane %v1430_v17, %v4233_v20  ;;  %v1445_v33 = vrot.slane %v1431_v27, %v4233_v20  ;;  %v1446_v34 = vcombine.high %v1422_v16, %v3821_v19  ;;  %v1447_v35 = vcombine.high %v1429_v26, %v3821_v19 }
 0x366   : > { %v1254_v18 = vpack.i.b16 %v1253_v53, %v1252_v6  ;;  %v1260_v21 = vpack.i.b16 %v1259_v13, %v1258_v7  ;;  %v3005_v22 = vcombine.low %v1251_v10, %v1251_v10  ;;  %v3006_v23 = vcombine.high %v1251_v10, %v1251_v10 }
 0x367   : > { %v3009_v24 = vcombine.low %v1257_v11, %v1257_v11  ;;  %v3010_v25 = vcombine.high %v1257_v11, %v1257_v11  ;;  %v1531_v37 = vrot.slane %v3018_v14, %v4231_v12  ;;  %v1448_v38 = vcombine.high %v1438_v32, %v3821_v19 }
 0x368   : > { %v3007_v28 = vcombine.low %v1254_v18, %v1254_v18  ;;  %v3008_v29 = vcombine.high %v1254_v18, %v1254_v18  ;;  %v3011_v30 = vcombine.low %v1260_v21, %v1260_v21  ;;  %v3012_v31 = vcombine.high %v1260_v21, %v1260_v21  ;;  %1286 = vst.msk [vmem:[#allocation2] sm:$0xf] %vm1285_vm6, %v3005_v22 }
 0x369   : > { %1287 = vst.msk [vmem:[#allocation2 + $0x4] sm:$0xf] %vm1285_vm6, %v3006_v23  ;;  %1290 = vst.msk [vmem:[#allocation2 + $0x10] sm:$0xf] %vm1285_vm6, %v3009_v24  ;;  %v1449_v39 = vcombine.high %v1445_v33, %v3821_v19  ;;  %v3015_v40 = vpack.c.bf16 %v1438_v32, %v1422_v16  ;;  %v3016_v41 = vpack.c.bf16 %v1445_v33, %v1429_v26 }
 0x36a   : > { %1291 = vst.msk [vmem:[#allocation2 + $0x14] sm:$0xf] %vm1285_vm6, %v3010_v25  ;;  %1288 = vst.msk [vmem:[#allocation2 + $0x8] sm:$0xf] %vm1285_vm6, %v3007_v28  ;;  %v1498_v42 = vcombine.low %v1473_v60, %v1481_v4  ;;  %v3019_v45 = vpack.c.bf16 %v1448_v38, %v1446_v34  ;;  %v1548_v47 = vcombine.low %v1523_v36, %v1531_v37 }
 0x36b   : > { %1289 = vst.msk [vmem:[#allocation2 + $0xc] sm:$0xf] %vm1285_vm6, %v3008_v29  ;;  %1292 = vst.msk [vmem:[#allocation2 + $0x18] sm:$0xf] %vm1285_vm6, %v3011_v30  ;;  %v1489_v43 = vrot.slane %v3015_v40, %v4231_v12  ;;  %v1497_v44 = vrot.slane %v3016_v41, %v4231_v12  ;;  %v3020_v46 = vpack.c.bf16 %v1449_v39, %v1447_v35 }
 0x36c   : > { %1293 = vst.msk [vmem:[#allocation2 + $0x1c] sm:$0xf] %vm1285_vm6, %v3012_v31  ;;  %v1539_v49 = vrot.slane %v3019_v45, %v4231_v12  ;;  %v1505_v51 = vrot.slane %v1498_v42, %v4233_v20  ;;  %v1555_v54 = vrot.slane %v1548_v47, %v4233_v20 }
 0x36d   : > { %v1506_v48 = vcombine.low %v1489_v43, %v1497_v44  ;;  %v1547_v50 = vrot.slane %v3020_v46, %v4231_v12 }
 0x36f   : > { %v1513_v52 = vrot.slane %v1506_v48, %v4233_v20  ;;  %v1556_v19 = vcombine.low %v1539_v49, %v1547_v50 }
 0x371   : > { %v1514_v55 = vcombine.low %v1505_v51, %v1513_v52  ;;  %v1515_v56 = vcombine.high %v1505_v51, %v1513_v52  ;;  %v1563_v57 = vrot.slane %v1556_v19, %v4233_v20 }
 0x373   : > { %v1564_v58 = vcombine.low %v1555_v54, %v1563_v57  ;;  %v1565_v59 = vcombine.high %v1555_v54, %v1563_v57  ;;  %v1569_v60 = vshrl.u32 %v1514_v55, 16  ;;  %v1575_v61 = vshrl.u32 %v1515_v56, 16 }
 0x375   : > { %v1568_v62 = vpack.i.b16 %v1564_v58, %v1514_v55  ;;  %v1570_v3 = vshrl.u32 %v1564_v58, 16  ;;  %v1574_v63 = vpack.i.b16 %v1565_v59, %v1515_v56  ;;  %v1576_v2 = vshrl.u32 %v1565_v59, 16 }
 0x377   : > { %v1571_v12 = vpack.i.b16 %v1570_v3, %v1569_v60  ;;  %v1577_v4 = vpack.i.b16 %v1576_v2, %v1575_v61  ;;  %v3021_v5 = vcombine.low %v1568_v62, %v1568_v62  ;;  %v3022_v6 = vcombine.high %v1568_v62, %v1568_v62 }
 0x378   : > { %v3025_v7 = vcombine.low %v1574_v63, %v1574_v63  ;;  %v3026_v8 = vcombine.high %v1574_v63, %v1574_v63 }
 0x379   : > { %v3023_v9 = vcombine.low %v1571_v12, %v1571_v12  ;;  %v3024_v10 = vcombine.high %v1571_v12, %v1571_v12  ;;  %v3027_v53 = vcombine.low %v1577_v4, %v1577_v4  ;;  %v3028_v11 = vcombine.high %v1577_v4, %v1577_v4  ;;  %1602 = vst.msk [vmem:[#allocation3] sm:$0xf] %vm1285_vm6, %v3021_v5 }
 0x37a   : > { %1603 = vst.msk [vmem:[#allocation3 + $0x4] sm:$0xf] %vm1285_vm6, %v3022_v6  ;;  %1606 = vst.msk [vmem:[#allocation3 + $0x10] sm:$0xf] %vm1285_vm6, %v3025_v7 }
 0x37b   : > { %1607 = vst.msk [vmem:[#allocation3 + $0x14] sm:$0xf] %vm1285_vm6, %v3026_v8  ;;  %1604 = vst.msk [vmem:[#allocation3 + $0x8] sm:$0xf] %vm1285_vm6, %v3023_v9 }
 0x37c   : > { %1605 = vst.msk [vmem:[#allocation3 + $0xc] sm:$0xf] %vm1285_vm6, %v3024_v10  ;;  %1608 = vst.msk [vmem:[#allocation3 + $0x18] sm:$0xf] %vm1285_vm6, %v3027_v53 }
 0x37d   : > { %1609 = vst.msk [vmem:[#allocation3 + $0x1c] sm:$0xf] %vm1285_vm6, %v3028_v11 }
 0x37e PF: > { %v4334_v20 = vld [vmem:[%s4198_s9] sm:$0xff]  ;;  %vm1611_vm7 = vcmask 261120   ;;  %v3421_v21 = vld [vmem:[#allocation7 + $0x8] sm:$0xff]   ;;  %v3828_v22 = vmov 0.0   ;;  %vm3829_vm8 = vmmov 0   ;;  %v1634_v32 = vlaneseq  ;;  %s3830_s14 = smov 104  }
 0x37f   : > { %v1612_v13 = vsel %vm1611_vm7, %v4334_v20, 0.0  ;;  %3132 = vmatprep.subr.bf16.mxu0 %v3828_v22  ;;  %3136 = vmatprep.mubr.msk.bf16.mxu0 %vm3829_vm8, %v3828_v22  ;;  %v3422_v23 = vld [vmem:[#allocation7] sm:$0xff]   ;;  %v3029_v42 = vld [vmem:[#allocation9] ss:$0 sm:$0xff]  ;;  %s3831_s29 = smov 120   ;;  %vm1885_vm11 = vcmask 64512  }
 0x380   : > { %1613 = vadd.xlane.f32.xlu0 %v1612_v13  ;;  %3133 = vmatpush3.bf16.msra.mxu0 %v3421_v21  ;;  %v1635_v33 = vshrl.u32 %v1634_v32, 7  ;;  %s3832_s8 = smov 112   ;;  %v3424_v49 = vld [vmem:[#allocation2 + $0x8] sm:$0xff]   ;;  %v3833_v51 = vmov 1983009808   ;;  %v3425_v32 = vld [vmem:[#allocation2 + $0x10] sm:$0xff]  }
 0x381   : > { %3140 = vmatprep.subr.bf16.mxu1 %v3828_v22  ;;  %3134 = vmatprep.subr.bf16.mxu0 %v3828_v22  ;;  %v1941_v50 = vsel %vm1885_vm11, %v3424_v49, 0  ;;  %v1728_v52 = vunpack.c.l.s4 %v3833_v51  ;;  %v3834_v19 = vmov 1934713408   ;;  %vm2085_vm12 = vcmask 130048   ;;  %s4662_s15 = sld [smem:[#allocation41_spill]]  ;;  %s3836_s27 = smov 8  }
 0x382   : > { %3142 = vmatprep.mubr.msk.bf16.mxu1 %vm3829_vm8, %v3828_v22  ;;  %v4348_v34 = vsub.s32 0, %v1635_v33  ;;  %v1760_v54 = vunpack.c.l.s4 %v3834_v19  ;;  %s3837_s21 = smov 16   ;;  %s3838_s10 = smov 24   ;;  %vm2511_vm13 = vcmask 195584   ;;  %vm2724_vm0 = vcmask 523264  }
 0x383   : > { %v1729_v55 = vunpack.c.0.s8 %v1728_v52  ;;  %s4663_s5 = sld [smem:[#allocation42_spill]]  ;;  %s3071_s4 = sshll.u32 %s3797_s23, 1 }
 0x384   : > { %3135 = vmatpush3.bf16.msra.mxu0 %v3422_v23  ;;  %v1637_v35 = vrot.slane %v4188_v0, %v4348_v34  ;;  %v1644_v38 = vrot.slane %v4193_v1, %v4348_v34  ;;  %v3423_v1 = vld [vmem:[#allocation2] sm:$0xff]   ;;  %v1761_v58 = vunpack.c.0.s8 %v1760_v54  ;;  %s4664_s9 = sld [smem:[#allocation45_spill]]  ;;  %s4671_s23 = sand.u32 1, %s3773_s30  }
 0x385   : > { %3146 = vmatprep.subr.bf16.mxu0 %v3828_v22  ;;  %v1890_v48 = vsel %vm1885_vm11, %v3423_v1, 0  ;;  %v4361_v59 = vsub.s32 %v1729_v55, %v1635_v33  ;;  %s4666_s11 = sld [smem:[#allocation50_spill]]  ;;  %s2771_s19 = scalar_lea.sflag [#allocation6], %s4671_s23 }
 0x386   : > { %3141 = vmatpush3.bf16.xpose.msra.mxu1 %v1890_v48  ;;  %v4363_v2 = vsub.s32 %v1761_v58, %v1635_v33  ;;  %v1871_v48 = vld [vmem:[%s4151_s7] sm:$0x1]  ;;  %s4669_s25 = sld [smem:[#allocation46_spill]] }
 0x387   : > { %3152 = vmatprep.subr.bf16.mxu1 %v3828_v22  ;;  %v3037_v49 = vadd.f32 -1.0, %v1871_v48 }
 0x409   : > { %v1614_v14 = vpop.xlane.xlu0 %1613 }
 0x40a   : > { %v1616_v15 = vmul.f32 0.03125, %v1614_v14 }
 0x40c   : > { %v1617_v16 = vsub.f32 %v4334_v20, %v1616_v15 }
 0x40e   : > { %v1618_v17 = vmul.f32 %v1617_v16, %v1617_v16 }
 0x410   : > { %v1619_v18 = vsel %vm1611_vm7, %v1618_v17, 0.0 }
 0x411   : > { %1620 = vadd.xlane.f32.xlu0 %v1619_v18 }
 0x49a   : > { %v1621_v24 = vpop.xlane.xlu0 %1620 }
 0x49b   : > { %v1622_v25 = vmul.f32 0.032258064, %v1621_v24 }
 0x49d   : > { %3439 = vrsqrt.f32 %v1622_v25  ;;  %vm1625_vm9 = vcmp.eq.f32.partialorder %v1622_v25, inf  ;;  %v1628_v28 = vand.u32 2147483648, %v1622_v25  ;;  %vm1627_vm10 = vcmp.eq.f32.partialorder %v1622_v25, 0.0 }
 0x4aa   : > { %v3440_v26 = vpop.eup %3439 }
 0x4ab   : > { %v1624_v27 = vmul.f32 %v3440_v26, %v1622_v25 }
 0x4ad   : > { %v1626_v29 = vsel %vm1625_vm9, %v1622_v25, %v1624_v27 }
 0x4ae   : > { %v1629_v30 = vsel %vm1627_vm10, %v1628_v28, %v1626_v29 }
 0x4af   : > { %v1630_v31 = vadd.f32 1e-12, %v1629_v30 }
 0x4b1   : > { %3441 = vrcp.f32 %v1630_v31 }
 0x4be   : > { %v3442_v36 = vpop.eup %3441 }
 0x4bf   : > { %v1632_v37 = vmul.f32 %v3442_v36, %v1617_v16  ;;  %v3426_v36 = vld [vmem:[#allocation2 + $0x18] sm:$0xff]  }
 0x4c1   : > { %v1639_v39 = vmul.f32 %v1637_v35, %v1632_v37 }
 0x4c3   : > { %v1646_v40 = vadd.f32 %v1644_v38, %v1639_v39  ;;  %v1992_v38 = vsel %vm1885_vm11, %v3425_v32, 0 }
 0x4c5   : > { %v1647_v41 = vpack.c.bf16 %v1646_v40, %v1646_v40 }
 0x4c7   : > { %3137 = vmatmul.mubr.msk.bf16.vlgmr.msra.gmra.mxu0 %vm1611_vm7, %v1647_v41 }
 0x4c8   : > { %3148 = vmatprep.mubr.msk.bf16.mxu0 %vm3829_vm8, %v3828_v22  ;;  %3147 = vmatpush3.bf16.xpose.msra.mxu0 %v1941_v50  ;;  %v1873_v50 = vmul.f32 1e+09, %v3037_v49  ;;  %v3430_v49 = vld [vmem:[#allocation3 + $0x18] sm:$0xff]  }
 0x4c9   : > { %3158 = vmatprep.subr.bf16.mxu0 %v3828_v22 }
 0x4ca   : > { %v1878_v51 = vrot.slane %v1873_v50, %v4348_v34 }
 0x587   : > { %v1708_v43 = vpop.f32.mrf.mxu0 }
 0x588   : > { %v1709_v44 = vadd.f32 %v3029_v42, %v1708_v43  ;;  %v2043_v42 = vsel %vm1885_vm11, %v3426_v36, 0  ;;  %v3835_v43 = vmov 0  }
 0x589   : > { %v3138_v45 = vpop.f32.mrf.mxu0 }
 0x58a   : > { %v1714_v46 = vmul.f32 0.35355338, %v1709_v44 }
 0x58b   : > { %v1711_v47 = vpop.f32.mrf.mxu0 }
 0x58c   : > { %1722 = vrot.lane.b32.xlu0 %v1714_v46, %s3830_s14  ;;  %1716 = vrot.lane.b32.xlu1 %v1714_v46, %s3831_s29  ;;  %s4665_s29 = sld [smem:[#allocation49_spill]] }
 0x58d   : > { %v3139_v0 = vpop.f32.mrf.mxu0 }
 0x590   : > { %1719 = vrot.lane.b32.xlu1 %v1714_v46, %s3832_s8 }
 0x5fe   : > { %v1723_v56 = vpop.permute.xlu0 %1722  ;;  %v1717_v57 = vpop.permute.xlu1 %1716 }
 0x5ff   : > { %v1741_v60 = vcombine.low %v1717_v57, %v1723_v56  ;;  %v1742_v61 = vcombine.high %v1717_v57, %v1723_v56 }
 0x601   : > { %v1749_v12 = vrot.slane %v1741_v60, %v4361_v59  ;;  %v1756_v4 = vrot.slane %v1742_v61, %v4361_v59 }
 0x602   : > { %v1720_v62 = vpop.permute.xlu1 %1719 }
 0x603   : > { %v1725_v3 = vcombine.low %v1714_v46, %v1720_v62  ;;  %v1726_v63 = vcombine.high %v1714_v46, %v1720_v62 }
 0x605   : > { %v1733_v5 = vrot.slane %v1725_v3, %v4361_v59  ;;  %v1740_v6 = vrot.slane %v1726_v63, %v4361_v59 }
 0x607   : > { %v1757_v7 = vcombine.low %v1733_v5, %v1749_v12  ;;  %v1758_v8 = vcombine.high %v1733_v5, %v1749_v12  ;;  %v1773_v9 = vcombine.low %v1740_v6, %v1756_v4  ;;  %v1774_v10 = vcombine.high %v1740_v6, %v1756_v4 }
 0x609   : > { %v1765_v53 = vrot.slane %v1757_v7, %v4363_v2  ;;  %v1772_v11 = vrot.slane %v1758_v8, %v4363_v2  ;;  %v1781_v13 = vrot.slane %v1773_v9, %v4363_v2  ;;  %v1788_v14 = vrot.slane %v1774_v10, %v4363_v2 }
 0x60b   : > { %v1789_v15 = vcombine.high %v1765_v53, %v3828_v22  ;;  %v1790_v16 = vcombine.high %v1772_v11, %v3828_v22  ;;  %v1791_v17 = vcombine.high %v1781_v13, %v3828_v22  ;;  %v1792_v18 = vcombine.high %v1788_v14, %v3828_v22 }
 0x60c   : > { %v3033_v21 = vpack.c.bf16 %v1781_v13, %v1765_v53  ;;  %v3034_v23 = vpack.c.bf16 %v1788_v14, %v1772_v11 }
 0x60d   : > { %v3035_v24 = vpack.c.bf16 %v1791_v17, %v1789_v15  ;;  %v3036_v25 = vpack.c.bf16 %v1792_v18, %v1790_v16 }
 0x60e   : > { %v1808_v26 = vrot.slane %v3033_v21, %v4361_v59  ;;  %v1816_v27 = vrot.slane %v3034_v23, %v4361_v59 }
 0x60f   : > { %v1833_v28 = vrot.slane %v3035_v24, %v4361_v59  ;;  %v1841_v29 = vrot.slane %v3036_v25, %v4361_v59 }
 0x610   : > { %v1817_v30 = vcombine.low %v1808_v26, %v1816_v27 }
 0x611   : > { %v1842_v31 = vcombine.low %v1833_v28, %v1841_v29 }
 0x612   : > { %v1824_v33 = vrot.slane %v1817_v30, %v4363_v2 }
 0x613   : > { %v1849_v35 = vrot.slane %v1842_v31, %v4363_v2 }
 0x614   : > { %v1854_v39 = vshrl.u32 %v1824_v33, 16  ;;  %v1825_v45 = vcombine.high %v1824_v33, %v3835_v43 }
 0x615   : > { %v1853_v37 = vpack.i.b16 %v1849_v35, %v1824_v33  ;;  %v1855_v40 = vshrl.u32 %v1849_v35, 16  ;;  %v1850_v44 = vcombine.high %v1849_v35, %v3835_v43 }
 0x616   : > { %v1860_v0 = vshrl.u32 %v1825_v45, 16 }
 0x617   : > { %3143 = vmatmul.mubr.msk.bf16.vlgmr.msra.gmra.mxu1 %vm1885_vm11, %v1853_v37  ;;  %v1856_v41 = vpack.i.b16 %v1855_v40, %v1854_v39  ;;  %v1861_v46 = vshrl.u32 %v1850_v44, 16  ;;  %v1859_v47 = vpack.i.b16 %v1850_v44, %v1825_v45  ;;  %v3428_v39 = vld [vmem:[#allocation3 + $0x8] sm:$0xff]  }
 0x618   : > { %3153 = vmatpush3.bf16.xpose.msra.mxu1 %v1992_v38  ;;  %3154 = vmatprep.mubr.msk.bf16.mxu1 %vm3829_vm8, %v3828_v22  ;;  %v3427_v38 = vld [vmem:[#allocation3] sm:$0xff]  }
 0x619   : > { %3149 = vmatmul.mubr.msk.bf16.vlgmr.msra.gmra.mxu0 %vm1885_vm11, %v1856_v41  ;;  %3164 = vmatprep.subr.bf16.mxu1 %v3828_v22  ;;  %v1862_v1 = vpack.i.b16 %v1861_v46, %v1860_v0 }
 0x61a   : > { %3159 = vmatpush3.bf16.xpose.msra.mxu0 %v2043_v42  ;;  %3160 = vmatprep.mubr.msk.bf16.mxu0 %vm3829_vm8, %v3828_v22 }
 0x61b   : > { %3170 = vmatprep.subr.bf16.mxu0 %v3828_v22 }
 0x61f   : > { %3155 = vmatmul.mubr.msk.bf16.vlgmr.msra.gmra.mxu1 %vm1885_vm11, %v1859_v47  ;;  %v3429_v47 = vld [vmem:[#allocation3 + $0x10] sm:$0xff]  }
 0x620   : > { %3166 = vmatprep.mubr.msk.bf16.mxu1 %vm3829_vm8, %v3828_v22  ;;  %3165 = vmatpush3.bf16.msra.mxu1 %v3427_v38 }
 0x621   : > { %3161 = vmatmul.mubr.msk.bf16.vlgmr.msra.gmra.mxu0 %vm1885_vm11, %v1862_v1  ;;  %3176 = vmatprep.subr.bf16.mxu1 %v3828_v22 }
 0x622   : > { %3172 = vmatprep.mubr.msk.bf16.mxu0 %vm3829_vm8, %v3828_v22  ;;  %3171 = vmatpush3.bf16.msra.mxu0 %v3428_v39 }
 0x623   : > { %3182 = vmatprep.subr.bf16.mxu0 %v3828_v22 }
 0x6d7   : > { %v1926_v52 = vpop.f32.mrf.mxu1 }
 0x6d8   : > { %v1927_v19 = vadd.f32 %v1926_v52, %v1878_v51 }
 0x6d9   : > { %v3144_v54 = vpop.f32.mrf.mxu1  ;;  %v1977_v55 = vpop.f32.mrf.mxu0 }
 0x6da   : > { %v1978_v56 = vadd.f32 %v1977_v55, %v1878_v51  ;;  %v2086_v57 = vsel %vm2085_vm12, %v1927_v19, -inf }
 0x6db   : > { %2087 = vmax.xlane.f32.xlu1 %v2086_v57  ;;  %v1929_v58 = vpop.f32.mrf.mxu1  ;;  %v3150_v60 = vpop.f32.mrf.mxu0  ;;  %v3431_v57 = vld [vmem:[%s4662_s15 + $0x8] sm:$0xff]  }
 0x6dc   : > { %v2089_v61 = vsel %vm2085_vm12, %v1978_v56, -inf }
 0x6dd   : > { %v3145_v62 = vpop.f32.mrf.mxu1  ;;  %2090 = vmax.xlane.f32.xlu0 %v2089_v61  ;;  %v1980_v3 = vpop.f32.mrf.mxu0 }
 0x6df   : > { %v3151_v63 = vpop.f32.mrf.mxu0  ;;  %v2028_v12 = vpop.f32.mrf.mxu1 }
 0x6e0   : > { %v2029_v4 = vadd.f32 %v2028_v12, %v1878_v51 }
 0x6e1   : > { %v3156_v34 = vpop.f32.mrf.mxu1  ;;  %v2079_v5 = vpop.f32.mrf.mxu0 }
 0x6e2   : > { %v2080_v6 = vadd.f32 %v2079_v5, %v1878_v51  ;;  %v2092_v7 = vsel %vm2085_vm12, %v2029_v4, -inf }
 0x6e3   : > { %2093 = vmax.xlane.f32.xlu1 %v2092_v7  ;;  %v2031_v8 = vpop.f32.mrf.mxu1  ;;  %v3162_v9 = vpop.f32.mrf.mxu0 }
 0x6e4   : > { %v2095_v11 = vsel %vm2085_vm12, %v2080_v6, -inf }
 0x6e5   : > { %v3157_v10 = vpop.f32.mrf.mxu1  ;;  %v2082_v53 = vpop.f32.mrf.mxu0 }
 0x6e7   : > { %2096 = vmax.xlane.f32.xlu1 %v2095_v11  ;;  %v3163_v13 = vpop.f32.mrf.mxu0 }
 0x764   : > { %v2088_v14 = vpop.xlane.xlu1 %2087 }
 0x765   : > { %v2098_v15 = vsub.f32 %v1927_v19, %v2088_v14 }
 0x766   : > { %v2091_v16 = vpop.xlane.xlu0 %2090 }
 0x767   : > { %v2102_v17 = vmul.f32 1.442695, %v2098_v15  ;;  %v2099_v18 = vsub.f32 %v1978_v56, %v2091_v16 }
 0x769   : > { %3443 = vpow2.f32 %v2102_v17  ;;  %v2104_v21 = vmul.f32 1.442695, %v2099_v18 }
 0x76b   : > { %3445 = vpow2.f32 %v2104_v21 }
 0x76c   : > { %v2094_v23 = vpop.xlane.xlu1 %2093 }
 0x76d   : > { %v2100_v24 = vsub.f32 %v2029_v4, %v2094_v23 }
 0x76f   : > { %v2106_v25 = vmul.f32 1.442695, %v2100_v24 }
 0x770   : > { %v2097_v26 = vpop.xlane.xlu1 %2096 }
 0x771   : > { %3447 = vpow2.f32 %v2106_v25  ;;  %v2101_v27 = vsub.f32 %v2080_v6, %v2097_v26 }
 0x773   : > { %v2108_v28 = vmul.f32 1.442695, %v2101_v27 }
 0x775   : > { %3449 = vpow2.f32 %v2108_v28 }
 0x776   : > { %v3444_v29 = vpop.eup %3443 }
 0x777   : > { %v2110_v30 = vsel %vm2085_vm12, %v3444_v29, 0.0 }
 0x778   : > { %v3446_v31 = vpop.eup %3445  ;;  %2111 = vadd.xlane.f32.xlu1 %v2110_v30 }
 0x779   : > { %v2113_v32 = vsel %vm2085_vm12, %v3446_v31, 0.0 }
 0x77c   : > { %2114 = vadd.xlane.f32.xlu1 %v2113_v32 }
 0x77e   : > { %v3448_v33 = vpop.eup %3447 }
 0x77f   : > { %v2116_v35 = vsel %vm2085_vm12, %v3448_v33, 0.0 }
 0x780   : > { %2117 = vadd.xlane.f32.xlu1 %v2116_v35 }
 0x782   : > { %v3450_v36 = vpop.eup %3449 }
 0x783   : > { %v2119_v37 = vsel %vm2085_vm12, %v3450_v36, 0.0 }
 0x784   : > { %2120 = vadd.xlane.f32.xlu0 %v2119_v37 }
 0x801   : > { %v2112_v40 = vpop.xlane.xlu1 %2111 }
 0x802   : > { %3451 = vrcp.f32 %v2112_v40 }
 0x805   : > { %v2115_v41 = vpop.xlane.xlu1 %2114 }
 0x806   : > { %3453 = vrcp.f32 %v2115_v41 }
 0x809   : > { %v2118_v42 = vpop.xlane.xlu1 %2117 }
 0x80a   : > { %3455 = vrcp.f32 %v2118_v42 }
 0x80d   : > { %v2121_v44 = vpop.xlane.xlu0 %2120 }
 0x80e   : > { %3457 = vrcp.f32 %v2121_v44 }
 0x80f   : > { %v3452_v45 = vpop.eup %3451 }
 0x810   : > { %v2126_v46 = vmul.f32 %v3452_v45, %v3444_v29 }
 0x812   : > { %v2130_v0 = vpack.c.bf16 %v2126_v46, %v2126_v46 }
 0x813   : > { %v3454_v1 = vpop.eup %3453 }
 0x814   : > { %3167 = vmatmul.mubr.msk.bf16.vlgmr.msra.gmra.mxu1 %vm2085_vm12, %v2130_v0  ;;  %v2127_v48 = vmul.f32 %v3454_v1, %v3446_v31 }
 0x815   : > { %3177 = vmatpush3.bf16.msra.mxu1 %v3429_v47  ;;  %3178 = vmatprep.mubr.msk.bf16.mxu1 %vm3829_vm8, %v3828_v22 }
 0x816   : > { %v2131_v50 = vpack.c.bf16 %v2127_v48, %v2127_v48  ;;  %3188 = vmatprep.subr.bf16.mxu1 %v3828_v22 }
 0x817   : > { %v3456_v51 = vpop.eup %3455 }
 0x818   : > { %3173 = vmatmul.mubr.msk.bf16.vlgmr.msra.gmra.mxu0 %vm2085_vm12, %v2131_v50  ;;  %v2128_v52 = vmul.f32 %v3456_v51, %v3448_v33 }
 0x819   : > { %3183 = vmatpush3.bf16.msra.mxu0 %v3430_v49  ;;  %3184 = vmatprep.mubr.msk.bf16.mxu0 %vm3829_vm8, %v3828_v22 }
 0x81a   : > { %v2132_v19 = vpack.c.bf16 %v2128_v52, %v2128_v52  ;;  %3196 = vmatprep.subr.bf16.mxu0 %v3828_v22 }
 0x81b   : > { %v3458_v54 = vpop.eup %3457 }
 0x81c   : > { %3179 = vmatmul.mubr.msk.bf16.vlgmr.msra.gmra.mxu1 %vm2085_vm12, %v2132_v19  ;;  %v2129_v55 = vmul.f32 %v3458_v54, %v3450_v36 }
 0x81d   : > { %3192 = vmatprep.mubr.msk.bf16.mxu1 %vm3829_vm8, %v3828_v22  ;;  %3189 = vmatpush3.bf16.msra.mxu1 %v3431_v57 }
 0x81e   : > { %v2133_v56 = vpack.c.bf16 %v2129_v55, %v2129_v55  ;;  %3190 = vmatprep.subr.bf16.mxu1 %v3828_v22 }
 0x820   : > { %3185 = vmatmul.mubr.msk.bf16.vlgmr.msra.gmra.mxu0 %vm2085_vm12, %v2133_v56  ;;  %v3432_v56 = vld [vmem:[%s4662_s15] sm:$0xff]  }
 0x821   : > { %3200 = vmatprep.mubr.msk.bf16.mxu0 %vm3829_vm8, %v3828_v22  ;;  %3191 = vmatpush3.bf16.msra.mxu1 %v3432_v56 }
 0x822   : > { %3204 = vmatprep.subr.bf16.mxu1 %v3828_v22 }
 0x8d4   : > { %v2185_v58 = vpop.f32.mrf.mxu1 }
 0x8d5   : > { %v2338_v12 = vpack.c.bf16 %v2185_v58, %v2185_v58 }
 0x8d6   : > { %v3168_v60 = vpop.f32.mrf.mxu1 }
 0x8d7   : > { %v2345_v8 = vrot.slane %v2338_v12, %v4361_v59 }
 0x8d8   : > { %v2188_v61 = vpop.f32.mrf.mxu1  ;;  %v2234_v62 = vpop.f32.mrf.mxu0 }
 0x8d9   : > { %v2372_v10 = vpack.c.bf16 %v2234_v62, %v2234_v62 }
 0x8da   : > { %v3169_v3 = vpop.f32.mrf.mxu1  ;;  %v3174_v63 = vpop.f32.mrf.mxu0 }
 0x8db   : > { %v2379_v23 = vrot.slane %v2372_v10, %v4361_v59 }
 0x8dc   : > { %v2237_v4 = vpop.f32.mrf.mxu0  ;;  %v2283_v34 = vpop.f32.mrf.mxu1 }
 0x8dd   : > { %v2346_v5 = vpack.c.bf16 %v2283_v34, %v2283_v34 }
 0x8de   : > { %v3175_v6 = vpop.f32.mrf.mxu0  ;;  %v3180_v7 = vpop.f32.mrf.mxu1 }
 0x8df   : > { %v2353_v9 = vrot.slane %v2346_v5, %v4361_v59 }
 0x8e0   : > { %v2286_v53 = vpop.f32.mrf.mxu1  ;;  %v2332_v11 = vpop.f32.mrf.mxu0 }
 0x8e1   : > { %v2354_v13 = vcombine.low %v2345_v8, %v2353_v9  ;;  %v2355_v14 = vcombine.high %v2345_v8, %v2353_v9  ;;  %v2380_v15 = vpack.c.bf16 %v2332_v11, %v2332_v11 }
 0x8e2   : > { %v3181_v16 = vpop.f32.mrf.mxu1  ;;  %v3186_v17 = vpop.f32.mrf.mxu0 }
 0x8e3   : > { %v2362_v18 = vrot.slane %v2354_v13, %v4363_v2  ;;  %v2387_v21 = vrot.slane %v2380_v15, %v4361_v59  ;;  %v2369_v25 = vrot.slane %v2355_v14, %v4363_v2  ;;  %v3054_v15 = vld [vmem:[%s4663_s5] ss:$0 sm:$0xff]  ;;  %s4668_s5 = sld [smem:[#allocation44_spill]] }
 0x8e4   : > { %v2335_v24 = vpop.f32.mrf.mxu0 }
 0x8e5   : > { %v2388_v26 = vcombine.low %v2379_v23, %v2387_v21  ;;  %v2389_v27 = vcombine.high %v2379_v23, %v2387_v21  ;;  %v2370_v29 = vcombine.high %v2362_v18, %v3835_v43  ;;  %v2371_v32 = vcombine.high %v2369_v25, %v3835_v43 }
 0x8e6   : > { %v3187_v28 = vpop.f32.mrf.mxu0  ;;  %v2410_v33 = vshrl.u32 %v2362_v18, 16  ;;  %v2426_v40 = vshrl.u32 %v2369_v25, 16 }
 0x8e7   : > { %v2396_v30 = vrot.slane %v2388_v26, %v4363_v2  ;;  %v2403_v31 = vrot.slane %v2389_v27, %v4363_v2  ;;  %v2418_v39 = vshrl.u32 %v2370_v29, 16  ;;  %v2434_v0 = vshrl.u32 %v2371_v32, 16 }
 0x8e9   : > { %v2404_v35 = vcombine.high %v2396_v30, %v3835_v43  ;;  %v2405_v36 = vcombine.high %v2403_v31, %v3835_v43  ;;  %v2408_v37 = vpack.i.b16 %v2396_v30, %v2362_v18  ;;  %v2411_v38 = vshrl.u32 %v2396_v30, 16 }
 0x8ea   : > { %v2424_v41 = vpack.i.b16 %v2403_v31, %v2369_v25  ;;  %v2427_v42 = vshrl.u32 %v2403_v31, 16  ;;  %v3433_v31 = vld [vmem:[#allocation16 + $0x8] sm:$0xff]  }
 0x8eb   : > { %v2412_v44 = vpack.i.b16 %v2411_v38, %v2410_v33  ;;  %v2416_v45 = vpack.i.b16 %v2404_v35, %v2370_v29  ;;  %v2419_v46 = vshrl.u32 %v2404_v35, 16  ;;  %v2432_v47 = vpack.i.b16 %v2405_v36, %v2371_v32  ;;  %3197 = vmatpush3.bf16.msra.mxu0 %v3433_v31  ;;  %v3434_v32 = vld [vmem:[#allocation16] sm:$0xff]   ;;  %v3436_v33 = vld [vmem:[%s4664_s9 + $0x10] sm:$0xff]  }
 0x8ec   : > { %v2428_v1 = vpack.i.b16 %v2427_v42, %v2426_v40  ;;  %v2435_v48 = vshrl.u32 %v2405_v36, 16  ;;  %v2438_v49 = vcombine.low %v2408_v37, %v2424_v41  ;;  %3198 = vmatprep.subr.bf16.mxu0 %v3828_v22 }
 0x8ed   : > { %v2420_v50 = vpack.i.b16 %v2419_v46, %v2418_v39  ;;  %v2446_v51 = vcombine.low %v2416_v45, %v2432_v47  ;;  %v3058_v45 = vld [vmem:[%s4665_s29] ss:$0 sm:$0xff]  ;;  %s2786_s29 = sshll.u32 %s762_s18, 4  ;;  %s4509_s29 = int_to_ptr.vmem [resolvable:$true] %s2786_s29 }
 0x8ee   : > { %v2436_v52 = vpack.i.b16 %v2435_v48, %v2434_v0  ;;  %v2463_v19 = vcombine.low %v2412_v44, %v2428_v1  ;;  %v2445_v54 = vrot.slane %v2438_v49, %v4361_v59  ;;  %v3059_v47 = vld [vmem:[%s4666_s11] ss:$0 sm:$0xff]  ;;  %v3437_v49 = vld [vmem:[%s4664_s9 + $0x8] sm:$0xff]   ;;  %s4670_s11 = sld [smem:[#allocation51_spill]] }
 0x8ef   : > { %v2453_v55 = vrot.slane %v2446_v51, %v4361_v59  ;;  %3199 = vmatpush3.bf16.msra.mxu0 %v3434_v32  ;;  %v3060_v51 = vld [vmem:[%s4668_s5] ss:$0 sm:$0xff] }
 0x8f0   : > { %v2471_v57 = vcombine.low %v2420_v50, %v2436_v52  ;;  %v2470_v60 = vrot.slane %v2463_v19, %v4361_v59  ;;  %v3438_v50 = vld [vmem:[%s4664_s9] sm:$0xff]  }
 0x8f1   : > { %v2454_v58 = vcombine.low %v2445_v54, %v2453_v55 }
 0x8f2   : > { %v2478_v61 = vrot.slane %v2471_v57, %v4361_v59 }
 0x8f3   : > { %v2461_v62 = vrot.slane %v2454_v58, %v4363_v2 }
 0x8f4   : > { %v2479_v3 = vcombine.low %v2470_v60, %v2478_v61 }
 0x8f5   : > { %v2491_v12 = vshrl.u32 %v2461_v62, 16  ;;  %v2462_v34 = vcombine.high %v2461_v62, %v3835_v43 }
 0x8f6   : > { %v2486_v63 = vrot.slane %v2479_v3, %v4363_v2 }
 0x8f7   : > { %v2497_v59 = vshrl.u32 %v2462_v34, 16 }
 0x8f8   : > { %v2492_v4 = vshrl.u32 %v2486_v63, 16  ;;  %v2487_v5 = vcombine.high %v2486_v63, %v3835_v43  ;;  %v2490_v6 = vpack.i.b16 %v2486_v63, %v2461_v62 }
 0x8fa   : > { %v2493_v7 = vpack.i.b16 %v2492_v4, %v2491_v12  ;;  %v2496_v8 = vpack.i.b16 %v2487_v5, %v2462_v34  ;;  %v2498_v9 = vshrl.u32 %v2487_v5, 16 }
 0x8fc   : > { %2500 = vrot.lane.b32.xlu1 %v2493_v7, %s3836_s27  ;;  %2502 = vrot.lane.b32.xlu0 %v2496_v8, %s3837_s21  ;;  %v2499_v10 = vpack.i.b16 %v2498_v9, %v2497_v59  ;;  %s4667_s27 = sld [smem:[#allocation26_spill]]  ;;  %s3839_s21 = smov [#allocation18]  }
 0x900   : > { %2504 = vrot.lane.b32.xlu1 %v2499_v10, %s3838_s10  ;;  %s3677_s10 = sshll.u32 %s3839_s21, 4  ;;  %s3678_s10 = int_to_ptr.vmem [resolvable:$false] %s3677_s10 }
 0x901   : > { %s3679_s13 = scalar_lea.vmem %s3678_s10, 256  ;;  %p3680_p9 = scmp.lt.s32.totalorder %s4509_s29, %s3678_s10 }
 0x902   : > { %s2782_s6 = sadd.s32 %s4667_s27, %s3071_s4  ;;  %s3673_s27 = scalar_lea.vmem %s4509_s29, 128 }
 0x903   : > { %s3072_s14 = sshll.u32 %s2782_s6, 7  ;;  %p3674_p2 = scmp.ne.s32.totalorder %s4509_s29, %s3673_s27 }
 0x904   : > { %s4507_s17 = scalar_lea.hbm %s4670_s11, %s3072_s14  ;;  %p3681_p11 = scmp.lt.s32.totalorder %s3679_s13, %s3673_s27 }
 0x905   : > { %p3675_p7 = pnand %p3674_p2, %p4118_p12 }
 0x906   : > { %p3682_p10 = por %p3681_p11, %p3680_p9 }
 0x907   : > { %p3676_p8 = pneg %p3675_p7 }
 0x909   : > { %p3683_p3 = pnand %p3682_p10, %p3676_p8 }
 0x96e   : > { %v2501_v53 = vpop.permute.xlu1 %2500  ;;  %v2503_v11 = vpop.permute.xlu0 %2502 }
 0x96f   : > { %v2508_v2 = vsel %vm1885_vm11, %v2490_v6, %v2501_v53 }
 0x970   : > { %v2510_v13 = vsel %vm2085_vm12, %v2508_v2, %v2503_v11 }
 0x972   : > { %v2505_v43 = vpop.permute.xlu1 %2504 }
 0x973   : > { %v2513_v14 = vsel %vm2511_vm13, %v2510_v13, %v2505_v43 }
 0x974   : > { %3193 = vmatmul.mubr.msk.bf16.vlgmr.msra.gmra.mxu1 %vm1611_vm7, %v2513_v14 }
 0x975   : > { %3212 = vmatprep.mubr.msk.bf16.mxu1 %vm3829_vm8, %v3828_v22 }
 0xa34   : > { %v2573_v16 = vpop.f32.mrf.mxu1 }
 0xa35   : > { %v2574_v17 = vadd.f32 %v3054_v15, %v2573_v16 }
 0xa36   : > { %v3194_v18 = vpop.f32.mrf.mxu1 }
 0xa37   : > { %v4464_v21 = vadd.f32 %v2574_v17, %v4334_v20  ;;  %v3435_v20 = vld [vmem:[%s4664_s9 + $0x18] sm:$0xff]  }
 0xa38   : > { %v2576_v23 = vpop.f32.mrf.mxu1  ;;  %3205 = vmatpush3.bf16.msra.mxu1 %v3435_v20 }
 0xa39   : > { %v2582_v24 = vsel %vm1611_vm7, %v4464_v21, 0.0  ;;  %3206 = vmatprep.subr.bf16.mxu1 %v3828_v22 }
 0xa3a   : > { %2583 = vadd.xlane.f32.xlu1 %v2582_v24  ;;  %v3195_v25 = vpop.f32.mrf.mxu1 }
 0xa3c   : > { %3207 = vmatpush3.bf16.msra.mxu1 %v3436_v33 }
 0xa3d   : > { %3208 = vmatprep.subr.bf16.mxu1 %v3828_v22 }
 0xa40   : > { %3209 = vmatpush3.bf16.msra.mxu1 %v3437_v49 }
 0xa41   : > { %3210 = vmatprep.subr.bf16.mxu1 %v3828_v22  ;;  %v3064_v22 = vld [vmem:[%s4669_s25] ss:$0 sm:$0xff] }
 0xa44   : > { %3211 = vmatpush3.bf16.msra.mxu1 %v3438_v50 }
 0xac3   : > { %v2584_v26 = vpop.xlane.xlu1 %2583 }
 0xac4   : > { %v2585_v27 = vmul.f32 0.03125, %v2584_v26 }
 0xac6   : > { %v2586_v28 = vsub.f32 %v4464_v21, %v2585_v27 }
 0xac8   : > { %v2587_v29 = vmul.f32 %v2586_v28, %v2586_v28 }
 0xaca   : > { %v2588_v30 = vsel %vm1611_vm7, %v2587_v29, 0.0 }
 0xacb   : > { %2589 = vadd.xlane.f32.xlu0 %v2588_v30 }
 0xb54   : > { %v2590_v35 = vpop.xlane.xlu0 %2589 }
 0xb55   : > { %v2591_v36 = vmul.f32 0.032258064, %v2590_v35 }
 0xb57   : > { %3459 = vrsqrt.f32 %v2591_v36  ;;  %vm2594_vm14 = vcmp.eq.f32.partialorder %v2591_v36, inf  ;;  %v2597_v39 = vand.u32 2147483648, %v2591_v36  ;;  %vm2596_vm15 = vcmp.eq.f32.partialorder %v2591_v36, 0.0 }
 0xb64   : > { %v3460_v37 = vpop.eup %3459 }
 0xb65   : > { %v2593_v38 = vmul.f32 %v3460_v37, %v2591_v36 }
 0xb67   : > { %v2595_v40 = vsel %vm2594_vm14, %v2591_v36, %v2593_v38 }
 0xb68   : > { %v2598_v41 = vsel %vm2596_vm15, %v2597_v39, %v2595_v40 }
 0xb69   : > { %v2599_v42 = vadd.f32 1e-12, %v2598_v41 }
 0xb6b   : > { %3461 = vrcp.f32 %v2599_v42 }
 0xb78   : > { %v3462_v44 = vpop.eup %3461 }
 0xb79   : > { %v2601_v46 = vmul.f32 %v3462_v44, %v2586_v28 }
 0xb7b   : > { %v2608_v0 = vmul.f32 %v3058_v45, %v2601_v46 }
 0xb7d   : > { %v2615_v1 = vadd.f32 %v3059_v47, %v2608_v0 }
 0xb7f   : > { %v2616_v48 = vpack.c.bf16 %v2615_v1, %v2615_v1 }
 0xb81   : > { %3201 = vmatmul.mubr.msk.bf16.vlgmr.msra.gmra.mxu0 %vm1611_vm7, %v2616_v48 }
 0xc41   : > { %v2677_v52 = vpop.f32.mrf.mxu0 }
 0xc42   : > { %v2678_v19 = vadd.f32 %v3060_v51, %v2677_v52 }
 0xc43   : > { %v3202_v54 = vpop.f32.mrf.mxu0 }
 0xc44   : > { %v2683_v55 = vmax.f32 %v2678_v19, 0.0 }
 0xc45   : > { %v2680_v56 = vpop.f32.mrf.mxu0 }
 0xc46   : > { %v2684_v57 = vpack.c.bf16 %v2683_v55, %v2683_v55 }
 0xc47   : > { %v3203_v58 = vpop.f32.mrf.mxu0 }
 0xc48   : > { %3213 = vmatmul.mubr.msk.bf16.vlgmr.msra.gmra.mxu1 %vm2724_vm0, %v2684_v57 }
 0xd08   : > { %v2762_v60 = vpop.f32.mrf.mxu1 }
 0xd09   : > { %v2763_v61 = vadd.f32 %v3064_v22, %v2762_v60 }
 0xd0a   : > { %v3214_v62 = vpop.f32.mrf.mxu1 }
 0xd0b   : > { %v2768_v3 = vadd.f32 %v2763_v61, %v4464_v21 }
 0xd0c   : > { %v2765_v63 = vpop.f32.mrf.mxu1 }
 0xd0d   : > { %2769 = vst.msk [vmem:[%s762_s18] sm:$0xff] %vm1611_vm7, %v2768_v3 }
 0xd0e   : > { %v3215_v12 = vpop.f32.mrf.mxu1 }
 0xd0f   : > { %3686 = shalt.err (!%p3683_p3)
}
 0xd10   : > { %s3687_s28 = scalar_lea.hbm %s4507_s17, 128  ;;  %s3691_s5 = scalar_lea.hbm %s4670_s11, 512 }
 0xd11   : > { %p3688_p1 = scmp.ne.s32.totalorder %s4507_s17, %s3687_s28  ;;  %p3692_p5 = scmp.lt.s32.totalorder %s4507_s17, %s4670_s11 }
 0xd12   : > { %p3693_p0 = scmp.lt.s32.totalorder %s3691_s5, %s3687_s28 }
 0xd13   : > { %p3689_p6 = pnand %p3688_p1, %p4118_p12 }
 0xd14   : > { %p3694_p2 = por %p3693_p0, %p3692_p5 }
 0xd15   : > { %p3690_p4 = pneg %p3689_p6 }
 0xd17   : > { %p3695_p7 = pnand %p3694_p2, %p3690_p4 }
 0xd19   : > { %3698 = shalt.err (!%p3695_p7)
}
 0xd1a   : > { %3246 = dma.vmem_to_hbm [thread:$0]  (%p4118_p12), %s4509_s29, 128, %s4507_s17, %s2771_s19  }
 0xd1b PF: > { %p3293_p8 = scmp.ge.s32.totalorder %s3809_s3, 2  ;;  %s2798_s22 = sand.u32 1, %s3769_s0  }
 0xd1c   : > { %s2799_s24 = scalar_lea.sflag [#allocation6], %s2798_s22 }
 0xd1d   : > { %p3275_p9 = pnand %p3293_p8, %p4131_p13 }
 0xd1f   : > { %p3276_p11 = pneg %p3275_p9 }
 0xd21   : > { %3764 = dma.done.wait (%p3276_p11), %s2799_s24, 128  }
 0xd22   : > { %3766 = vsyncadd (%p3276_p11), %s2799_s24, 4294967168  ;;  %s39_s3 = sadd.s32 1, %s3809_s3   ;;  %s4672_s26 = sld [smem:[#allocation25_spill]] }
 0xd23   : > { %p36_p10 = scmp.ge.s32.totalorder %s39_s3, 6   ;;  %s4673_s22 = sld [smem:[#allocation31_spill]] }
 0xd24   : > { %s4674_s2 = sld [smem:[#allocation27_spill]]  ;;  %s4678_s0 = smov %s3773_s30 }
 0xd25   : > { %s4675_s23 = sld [smem:[#allocation28_spill]]  ;;  %s4679_s30 = smov %s3777_s20 }
 0xd26   : > { %s4676_s24 = sld [smem:[#allocation29_spill]]  ;;  %s4680_s20 = smov %s4126_s16 }
 0xd27   : > { %s4677_s25 = sld [smem:[#allocation30_spill]]  ;;  %s4681_s21 = smov %s3785_s1 }
 0xd28   : > { %s4682_s1 = smov %s4672_s26  ;;  %38 = sbr.rel (!%p36_p10) target bundleno = 34 (0x22), region = 179 }
 0xd2d   :  { %2804 = vsyncpa [#allocation5], 1 }
 0xd2e   :  { %2806 = vsyncpa [#allocation5 + $0x1], 1 }
 0xd2f   :  { %2807 = vsyncpa [#allocation8], 1 }
 0xd30   :  { %2808 = vsyncpa [#allocation11], 1 }
 0xd31   :  { %2809 = vsyncpa [#allocation14], 1 }
 0xd32   :  { %2810 = vsyncpa [#allocation17], 1 }
 0xd33   :  { %2811 = vsyncpa [#allocation6], 1 }
 0xd34   :  { %2813 = vsyncpa [#allocation6 + $0x1], 1 }

</bundles_post_ra>
